<compile_context>
chip_gen: v6e
topology: v6e:2x2x1
jax: 0.10.0
libtpu: 0.0.40
codegen_flags: <defaults>
</compile_context>

<pallas_src>
import numpy as np
import jax
import jax.numpy as jnp
from jax.experimental import pallas as pl
from jax.experimental.pallas import tpu as pltpu


def gru_recurrence_kernel(gi_ref, len_ref, w_hh_ref, b_hh_n_ref, out_ref, h_ref):
    """One grid step == one chunk of TC timesteps of the GRU recurrence."""
    c = pl.program_id(0)
    TC = gi_ref.shape[0]

    @pl.when(c == 0)
    def _():
        h_ref[...] = jnp.zeros_like(h_ref)

    lens = len_ref[...]          # (B, 1) int32
    w_r = w_hh_ref[0]            # (H, H) gate-major recurrent weights
    w_z = w_hh_ref[1]
    w_n = w_hh_ref[2]
    b_n = b_hh_n_ref[...]        # (1, H)

    def step(tt, h_prev):
        t = c * TC + tt
        gi_t = gi_ref[tt]        # (3, B, H): precomputed x@W_ih (+ folded biases)
        gi_r, gi_z, gi_n = gi_t[0], gi_t[1], gi_t[2]

        r = jax.nn.sigmoid(
            gi_r + jnp.dot(h_prev, w_r, preferred_element_type=jnp.float32))
        z = jax.nn.sigmoid(
            gi_z + jnp.dot(h_prev, w_z, preferred_element_type=jnp.float32))
        n = jnp.tanh(
            gi_n + r * (jnp.dot(h_prev, w_n, preferred_element_type=jnp.float32) + b_n))
        h_new = (1.0 - z) * n + z * h_prev

        # packed-sequence semantics: finished sequences keep h, emit zeros.
        valid = t < lens                                  # (B, 1) bool
        h_next = jnp.where(valid, h_new, h_prev)
        out_ref[tt] = jnp.where(valid, h_next, 0.0).astype(out_ref.dtype)
        return h_next

    h_final = jax.lax.fori_loop(0, TC, step, h_ref[...], unroll=True)
    h_ref[...] = h_final


def gru_model_forward(x, lengths, params, time_chunk=16):
    """x: (B, T, D) float32 batch-first; lengths: host numpy int array (B,)."""
    B, T, D = x.shape
    H = params["w_hh_g"].shape[-1]
    O = params["w_fc_t"].shape[-1]
    T_max = int(np.max(lengths))                 # pad_packed pads to max(length)

    # --- padding for clean TPU layout -------------------------------------
    # batch -> multiple of 8 sublanes (padded rows get length 0),
    # hidden -> multiple of 128 lanes (zero lanes stay zero through the GRU).
    B_pad = -(-B // 8) * 8
    H_pad = -(-H // 128) * 128
    pad_h = H_pad - H

    lens_np = np.zeros((B_pad,), np.int32)
    lens_np[:B] = np.asarray(lengths, np.int32)
    len_col = jnp.asarray(lens_np).reshape(B_pad, 1)
    if B_pad != B:
        x = jnp.pad(x, ((0, B_pad - B), (0, 0), (0, 0)))

    w_ih_g = jnp.pad(params["w_ih_g"], ((0, 0), (0, 0), (0, pad_h)))   # (3, D, Hp)
    w_hh_g = jnp.pad(params["w_hh_g"], ((0, 0), (0, pad_h), (0, pad_h)))  # (3, Hp, Hp)
    b_gates = jnp.pad(params["b_gates"], ((0, 0), (0, pad_h)))          # (3, Hp)
    b_hh_n = jnp.pad(params["b_hh_n"], ((0, 0), (0, pad_h)))            # (1, Hp)
    w_fc_t = jnp.pad(params["w_fc_t"], ((0, pad_h), (0, 0)))            # (Hp, O)

    TC = min(time_chunk, T_max)
    num_chunks = -(-T_max // TC)
    T_pad = num_chunks * TC

    # Hoisted input projection: one MXU-shaped matmul over all timesteps,
    # gate-major / time-major (T, 3, B, Hp); b_ih and b_hh_{r,z} folded in.
    gi = jnp.einsum("btd,gdh->tgbh", x[:, :T_max, :], w_ih_g)
    gi = gi + b_gates[None, :, None, :]
    if T_pad != T_max:
        gi = jnp.pad(gi, ((0, T_pad - T_max), (0, 0), (0, 0), (0, 0)))

    h_seq = pl.pallas_call(
        gru_recurrence_kernel,
        out_shape=jax.ShapeDtypeStruct((T_pad, B_pad, H_pad), jnp.float32),
        grid_spec=pltpu.PrefetchScalarGridSpec(
            num_scalar_prefetch=0,
            grid=(num_chunks,),
            in_specs=[
                pl.BlockSpec((TC, 3, B_pad, H_pad), lambda c: (c, 0, 0, 0)),  # gi chunk
                pl.BlockSpec((B_pad, 1), lambda c: (0, 0)),                   # lengths
                pl.BlockSpec((3, H_pad, H_pad), lambda c: (0, 0, 0)),         # W_hh
                pl.BlockSpec((1, H_pad), lambda c: (0, 0)),                   # b_hh_n
            ],
            out_specs=pl.BlockSpec((TC, B_pad, H_pad), lambda c: (c, 0, 0)),
            scratch_shapes=[pltpu.VMEM((B_pad, H_pad), jnp.float32)],         # carried h_t
        ),
        compiler_params=pltpu.CompilerParams(
            dimension_semantics=("arbitrary",)),          # time recurrence
    )(gi, len_col, w_hh_g, b_hh_n)

    h_seq = h_seq[:T_max, :B, :]                          # (T_max, B, Hp)
    # Deferred fc: one lane-dense matmul over padded H (extra rows are zero);
    # einsum also restores batch-first layout.
    return jnp.einsum("tbh,ho->bto", h_seq, w_fc_t) + params["b_fc"]


def init_params(key, input_dim, hidden_dim, output_dim):
    """Deterministic init mirroring PyTorch's uniform(-1/sqrt(fan), 1/sqrt(fan))."""
    D, H, O = input_dim, hidden_dim, output_dim
    k = 1.0 / np.sqrt(H)
    ks = jax.random.split(key, 6)
    w_ih = jax.random.uniform(ks[0], (3 * H, D), jnp.float32, -k, k)
    w_hh = jax.random.uniform(ks[1], (3 * H, H), jnp.float32, -k, k)
    b_ih = jax.random.uniform(ks[2], (3 * H,), jnp.float32, -k, k)
    b_hh = jax.random.uniform(ks[3], (3 * H,), jnp.float32, -k, k)
    w_fc = jax.random.uniform(ks[4], (O, H), jnp.float32, -k, k)
    b_fc = jax.random.uniform(ks[5], (O,), jnp.float32, -k, k)

    # gate-major (PyTorch gate order [r, z, n]), pre-transposed for x@W / h@W
    w_ih_g = jnp.transpose(w_ih.reshape(3, H, D), (0, 2, 1))   # (3, D, H)
    w_hh_g = jnp.transpose(w_hh.reshape(3, H, H), (0, 2, 1))   # (3, H, H)
    b_ih_g = b_ih.reshape(3, H)
    b_hh_g = b_hh.reshape(3, H)
    # bias folding: gi absorbs b_ih (all gates) + b_hh for r,z; only b_hh_n
    # must remain inside the loop (inside r * (h@W_hh_n + b_hh_n)).
    b_gates = b_ih_g + b_hh_g.at[2].set(0.0)                   # (3, H)
    b_hh_n = b_hh_g[2].reshape(1, H)                           # (1, H)
    return dict(w_ih_g=w_ih_g, w_hh_g=w_hh_g, b_ih_g=b_ih_g, b_hh_g=b_hh_g,
                b_gates=b_gates, b_hh_n=b_hh_n, w_fc_t=w_fc.T, b_fc=b_fc)


def gru_model_reference(x, lengths, params):
    """Pure-JAX reference (lax.scan) of the same packed-GRU + fc semantics."""
    B = x.shape[0]
    H = params["w_hh_g"].shape[-1]
    T_max = int(np.max(lengths))
    lens = jnp.asarray(lengths, jnp.int32)[:, None]
    xs = jnp.transpose(x[:, :T_max], (1, 0, 2))
    ts = jnp.arange(T_max, dtype=jnp.int32)
    wi, wh = params["w_ih_g"], params["w_hh_g"]
    bi, bh = params["b_ih_g"], params["b_hh_g"]

    def step(h, inp):
        x_t, t = inp
        r = jax.nn.sigmoid(x_t @ wi[0] + bi[0] + h @ wh[0] + bh[0])
        z = jax.nn.sigmoid(x_t @ wi[1] + bi[1] + h @ wh[1] + bh[1])
        n = jnp.tanh(x_t @ wi[2] + bi[2] + r * (h @ wh[2] + bh[2]))
        h_new = (1.0 - z) * n + z * h
        valid = t < lens
        h_next = jnp.where(valid, h_new, h)
        return h_next, jnp.where(valid, h_next, 0.0)

    _, hs = jax.lax.scan(step, jnp.zeros((B, H), jnp.float32), (xs, ts))
    return jnp.einsum("tbh,ho->bto", hs, params["w_fc_t"]) + params["b_fc"]


if __name__ == "__main__":
    input_dim, hidden_dim, output_dim = 16, 32, 8
    B, T = 2, 8

    key = jax.random.PRNGKey(0)
    k_x, k_p = jax.random.split(key)
    x = jax.random.normal(k_x, (B, T, input_dim), jnp.float32)
    lengths = np.array([8, 5], dtype=np.int32)     # host-side, like PyTorch
    params = init_params(k_p, input_dim, hidden_dim, output_dim)

    out = jax.block_until_ready(gru_model_forward(x, lengths, params))
    ref = jax.block_until_ready(gru_model_reference(x, lengths, params))

    assert out.shape == (B, int(np.max(lengths)), output_dim)
    np.testing.assert_allclose(np.asarray(out), np.asarray(ref),
                               rtol=1e-4, atol=1e-5)

    print("KERNEL_OK")
</pallas_src>

<mosaic_0001>
module attributes {stable_mosaic.version = 11 : i64} {
  func.func @gru_recurrence_kernel(%arg0: i32, %arg1: memref<8x3x8x128xf32, #tpu.memory_space<vmem>>, %arg2: memref<8x1xi32, #tpu.memory_space<vmem>>, %arg3: memref<3x128x128xf32, #tpu.memory_space<vmem>>, %arg4: memref<1x128xf32, #tpu.memory_space<vmem>>, %arg5: memref<8x8x128xf32, #tpu.memory_space<vmem>>, %arg6: memref<8x128xf32, #tpu.memory_space<vmem>>) attributes {dimension_semantics = [#tpu.dimension_semantics<arbitrary>], iteration_bounds = array<i64: 1>, scalar_prefetch = 0 : i64, scratch_operands = 1 : i64, tpu.core_type = #tpu.core_type<tc>, window_params = [{transform_indices = @transform_0, window_bounds = array<i64: 8, 3, 8, 128>}, {pipeline_mode = #tpu.pipeline_mode<synchronous>, transform_indices = @transform_1, window_bounds = array<i64: 8, 1>}, {pipeline_mode = #tpu.pipeline_mode<synchronous>, transform_indices = @transform_2, window_bounds = array<i64: 3, 128, 128>}, {pipeline_mode = #tpu.pipeline_mode<synchronous>, transform_indices = @transform_3, window_bounds = array<i64: 1, 128>}, {transform_indices = @transform_4, window_bounds = array<i64: 8, 8, 128>}]} {
    %c0_i32 = arith.constant 0 : i32
    %0 = arith.cmpi eq, %arg0, %c0_i32 : i32
    %1 = arith.extui %0 : i1 to i32
    %c0_i32_0 = arith.constant 0 : i32
    %2 = arith.cmpi ne, %1, %c0_i32_0 : i32
    scf.if %2 {
      %cst_119 = arith.constant 0.000000e+00 : f32
      %405 = vector.broadcast %cst_119 : f32 to vector<8x128xf32>
      %c0_120 = arith.constant 0 : index
      %c0_121 = arith.constant 0 : index
      %406 = vector.load %arg6[%c0_120, %c0_121] : memref<8x128xf32, #tpu.memory_space<vmem>>, vector<8x128xf32>
      tpu.vector_store %arg6[%c0_120, %c0_121], %405 {strides = array<i32>} : memref<8x128xf32, #tpu.memory_space<vmem>>, vector<8x128xf32>,
    } else {
    }
    %c0 = arith.constant 0 : index
    %c0_1 = arith.constant 0 : index
    %3 = vector.load %arg2[%c0, %c0_1] : memref<8x1xi32, #tpu.memory_space<vmem>>, vector<8x1xi32>
    %c0_2 = arith.constant 0 : index
    %c0_3 = arith.constant 0 : index
    %c0_4 = arith.constant 0 : index
    %4 = vector.load %arg3[%c0_2, %c0_3, %c0_4] : memref<3x128x128xf32, #tpu.memory_space<vmem>>, vector<1x128x128xf32>
    %5 = vector.shape_cast %4 : vector<1x128x128xf32> to vector<128x128xf32>
    %c1 = arith.constant 1 : index
    %c0_5 = arith.constant 0 : index
    %c0_6 = arith.constant 0 : index
    %6 = vector.load %arg3[%c1, %c0_5, %c0_6] : memref<3x128x128xf32, #tpu.memory_space<vmem>>, vector<1x128x128xf32>
    %7 = vector.shape_cast %6 : vector<1x128x128xf32> to vector<128x128xf32>
    %c2 = arith.constant 2 : index
    %c0_7 = arith.constant 0 : index
    %c0_8 = arith.constant 0 : index
    %8 = vector.load %arg3[%c2, %c0_7, %c0_8] : memref<3x128x128xf32, #tpu.memory_space<vmem>>, vector<1x128x128xf32>
    %9 = vector.shape_cast %8 : vector<1x128x128xf32> to vector<128x128xf32>
    %c0_9 = arith.constant 0 : index
    %c0_10 = arith.constant 0 : index
    %10 = vector.load %arg4[%c0_9, %c0_10] : memref<1x128xf32, #tpu.memory_space<vmem>>, vector<1x128xf32>
    %c0_11 = arith.constant 0 : index
    %c0_12 = arith.constant 0 : index
    %11 = vector.load %arg6[%c0_11, %c0_12] : memref<8x128xf32, #tpu.memory_space<vmem>>, vector<8x128xf32>
    %c0_i32_13 = arith.constant 0 : i32
    %c8_i32 = arith.constant 8 : i32
    %12 = arith.muli %arg0, %c8_i32 : i32
    %13 = arith.addi %12, %c0_i32_13 : i32
    %14 = arith.index_cast %c0_i32_13 : i32 to index
    %c0_14 = arith.constant 0 : index
    %c0_15 = arith.constant 0 : index
    %c0_16 = arith.constant 0 : index
    %15 = vector.load %arg1[%14, %c0_14, %c0_15, %c0_16] : memref<8x3x8x128xf32, #tpu.memory_space<vmem>>, vector<1x3x8x128xf32>
    %16 = vector.shape_cast %15 : vector<1x3x8x128xf32> to vector<3x8x128xf32>
    %17 = vector.extract_strided_slice %16 {offsets = [0, 0, 0], sizes = [1, 8, 128], strides = [1, 1, 1]} : vector<3x8x128xf32> to vector<1x8x128xf32>
    %18 = vector.shape_cast %17 : vector<1x8x128xf32> to vector<8x128xf32>
    %19 = vector.extract_strided_slice %16 {offsets = [1, 0, 0], sizes = [1, 8, 128], strides = [1, 1, 1]} : vector<3x8x128xf32> to vector<1x8x128xf32>
    %20 = vector.shape_cast %19 : vector<1x8x128xf32> to vector<8x128xf32>
    %21 = vector.extract_strided_slice %16 {offsets = [2, 0, 0], sizes = [1, 8, 128], strides = [1, 1, 1]} : vector<3x8x128xf32> to vector<1x8x128xf32>
    %22 = vector.shape_cast %21 : vector<1x8x128xf32> to vector<8x128xf32>
    %cst = arith.constant dense<0.000000e+00> : vector<8x128xf32>
    %23 = tpu.matmul %11, %5, %cst {dimension_numbers = #tpu.dot_dimension_numbers<[1], [0], [0], [1], [0, 0, 1, 1], [], []>} : vector<8x128xf32>, vector<128x128xf32>, vector<8x128xf32> -> vector<8x128xf32>
    %24 = arith.addf %18, %23 : vector<8x128xf32>
    %25 = arith.negf %24 : vector<8x128xf32>
    %26 = math.exp %25 : vector<8x128xf32>
    %cst_17 = arith.constant 1.000000e+00 : f32
    %27 = vector.broadcast %cst_17 : f32 to vector<8x128xf32>
    %28 = arith.addf %27, %26 : vector<8x128xf32>
    %29 = arith.divf %27, %28 : vector<8x128xf32>
    %cst_18 = arith.constant dense<0.000000e+00> : vector<8x128xf32>
    %30 = tpu.matmul %11, %7, %cst_18 {dimension_numbers = #tpu.dot_dimension_numbers<[1], [0], [0], [1], [0, 0, 1, 1], [], []>} : vector<8x128xf32>, vector<128x128xf32>, vector<8x128xf32> -> vector<8x128xf32>
    %31 = arith.addf %20, %30 : vector<8x128xf32>
    %32 = arith.negf %31 : vector<8x128xf32>
    %33 = math.exp %32 : vector<8x128xf32>
    %cst_19 = arith.constant 1.000000e+00 : f32
    %34 = vector.broadcast %cst_19 : f32 to vector<8x128xf32>
    %35 = arith.addf %34, %33 : vector<8x128xf32>
    %36 = arith.divf %34, %35 : vector<8x128xf32>
    %cst_20 = arith.constant dense<0.000000e+00> : vector<8x128xf32>
    %37 = tpu.matmul %11, %9, %cst_20 {dimension_numbers = #tpu.dot_dimension_numbers<[1], [0], [0], [1], [0, 0, 1, 1], [], []>} : vector<8x128xf32>, vector<128x128xf32>, vector<8x128xf32> -> vector<8x128xf32>
    %38 = vector.broadcast %10 : vector<1x128xf32> to vector<8x128xf32>
    %39 = arith.addf %37, %38 : vector<8x128xf32>
    %40 = arith.mulf %29, %39 : vector<8x128xf32>
    %41 = arith.addf %22, %40 : vector<8x128xf32>
    %42 = math.tanh %41 : vector<8x128xf32>
    %cst_21 = arith.constant 1.000000e+00 : f32
    %43 = vector.broadcast %cst_21 : f32 to vector<8x128xf32>
    %44 = arith.subf %43, %36 : vector<8x128xf32>
    %45 = arith.mulf %44, %42 : vector<8x128xf32>
    %46 = arith.mulf %36, %11 : vector<8x128xf32>
    %47 = arith.addf %45, %46 : vector<8x128xf32>
    %48 = vector.broadcast %13 : i32 to vector<8x1xi32>
    %49 = arith.cmpi slt, %48, %3 : vector<8x1xi32>
    %50 = vector.shape_cast %49 : vector<8x1xi1> to vector<8x1xi1>
    %51 = vector.broadcast %50 : vector<8x1xi1> to vector<8x128xi1>
    %52 = arith.select %51, %47, %11 : vector<8x128xi1>, vector<8x128xf32>
    %cst_22 = arith.constant 0.000000e+00 : f32
    %53 = vector.shape_cast %49 : vector<8x1xi1> to vector<8x1xi1>
    %54 = vector.broadcast %53 : vector<8x1xi1> to vector<8x128xi1>
    %55 = vector.broadcast %cst_22 : f32 to vector<8x128xf32>
    %56 = arith.select %54, %52, %55 : vector<8x128xi1>, vector<8x128xf32>
    %57 = arith.index_cast %c0_i32_13 : i32 to index
    %c0_23 = arith.constant 0 : index
    %c0_24 = arith.constant 0 : index
    %58 = vector.load %arg5[%57, %c0_23, %c0_24] : memref<8x8x128xf32, #tpu.memory_space<vmem>>, vector<1x8x128xf32>
    %59 = vector.shape_cast %58 : vector<1x8x128xf32> to vector<8x128xf32>
    %60 = vector.shape_cast %56 : vector<8x128xf32> to vector<1x8x128xf32>
    tpu.vector_store %arg5[%57, %c0_23, %c0_24], %60 {strides = array<i32>} : memref<8x8x128xf32, #tpu.memory_space<vmem>>, vector<1x8x128xf32>,
    %c1_i32 = arith.constant 1 : i32
    %c8_i32_25 = arith.constant 8 : i32
    %61 = arith.muli %arg0, %c8_i32_25 : i32
    %62 = arith.addi %61, %c1_i32 : i32
    %63 = arith.index_cast %c1_i32 : i32 to index
    %c0_26 = arith.constant 0 : index
    %c0_27 = arith.constant 0 : index
    %c0_28 = arith.constant 0 : index
    %64 = vector.load %arg1[%63, %c0_26, %c0_27, %c0_28] : memref<8x3x8x128xf32, #tpu.memory_space<vmem>>, vector<1x3x8x128xf32>
    %65 = vector.shape_cast %64 : vector<1x3x8x128xf32> to vector<3x8x128xf32>
    %66 = vector.extract_strided_slice %65 {offsets = [0, 0, 0], sizes = [1, 8, 128], strides = [1, 1, 1]} : vector<3x8x128xf32> to vector<1x8x128xf32>
    %67 = vector.shape_cast %66 : vector<1x8x128xf32> to vector<8x128xf32>
    %68 = vector.extract_strided_slice %65 {offsets = [1, 0, 0], sizes = [1, 8, 128], strides = [1, 1, 1]} : vector<3x8x128xf32> to vector<1x8x128xf32>
    %69 = vector.shape_cast %68 : vector<1x8x128xf32> to vector<8x128xf32>
    %70 = vector.extract_strided_slice %65 {offsets = [2, 0, 0], sizes = [1, 8, 128], strides = [1, 1, 1]} : vector<3x8x128xf32> to vector<1x8x128xf32>
    %71 = vector.shape_cast %70 : vector<1x8x128xf32> to vector<8x128xf32>
    %cst_29 = arith.constant dense<0.000000e+00> : vector<8x128xf32>
    %72 = tpu.matmul %52, %5, %cst_29 {dimension_numbers = #tpu.dot_dimension_numbers<[1], [0], [0], [1], [0, 0, 1, 1], [], []>} : vector<8x128xf32>, vector<128x128xf32>, vector<8x128xf32> -> vector<8x128xf32>
    %73 = arith.addf %67, %72 : vector<8x128xf32>
    %74 = arith.negf %73 : vector<8x128xf32>
    %75 = math.exp %74 : vector<8x128xf32>
    %cst_30 = arith.constant 1.000000e+00 : f32
    %76 = vector.broadcast %cst_30 : f32 to vector<8x128xf32>
    %77 = arith.addf %76, %75 : vector<8x128xf32>
    %78 = arith.divf %76, %77 : vector<8x128xf32>
    %cst_31 = arith.constant dense<0.000000e+00> : vector<8x128xf32>
    %79 = tpu.matmul %52, %7, %cst_31 {dimension_numbers = #tpu.dot_dimension_numbers<[1], [0], [0], [1], [0, 0, 1, 1], [], []>} : vector<8x128xf32>, vector<128x128xf32>, vector<8x128xf32> -> vector<8x128xf32>
    %80 = arith.addf %69, %79 : vector<8x128xf32>
    %81 = arith.negf %80 : vector<8x128xf32>
    %82 = math.exp %81 : vector<8x128xf32>
    %cst_32 = arith.constant 1.000000e+00 : f32
    %83 = vector.broadcast %cst_32 : f32 to vector<8x128xf32>
    %84 = arith.addf %83, %82 : vector<8x128xf32>
    %85 = arith.divf %83, %84 : vector<8x128xf32>
    %cst_33 = arith.constant dense<0.000000e+00> : vector<8x128xf32>
    %86 = tpu.matmul %52, %9, %cst_33 {dimension_numbers = #tpu.dot_dimension_numbers<[1], [0], [0], [1], [0, 0, 1, 1], [], []>} : vector<8x128xf32>, vector<128x128xf32>, vector<8x128xf32> -> vector<8x128xf32>
    %87 = vector.broadcast %10 : vector<1x128xf32> to vector<8x128xf32>
    %88 = arith.addf %86, %87 : vector<8x128xf32>
    %89 = arith.mulf %78, %88 : vector<8x128xf32>
    %90 = arith.addf %71, %89 : vector<8x128xf32>
    %91 = math.tanh %90 : vector<8x128xf32>
    %cst_34 = arith.constant 1.000000e+00 : f32
    %92 = vector.broadcast %cst_34 : f32 to vector<8x128xf32>
    %93 = arith.subf %92, %85 : vector<8x128xf32>
    %94 = arith.mulf %93, %91 : vector<8x128xf32>
    %95 = arith.mulf %85, %52 : vector<8x128xf32>
    %96 = arith.addf %94, %95 : vector<8x128xf32>
    %97 = vector.broadcast %62 : i32 to vector<8x1xi32>
    %98 = arith.cmpi slt, %97, %3 : vector<8x1xi32>
    %99 = vector.shape_cast %98 : vector<8x1xi1> to vector<8x1xi1>
    %100 = vector.broadcast %99 : vector<8x1xi1> to vector<8x128xi1>
    %101 = arith.select %100, %96, %52 : vector<8x128xi1>, vector<8x128xf32>
    %cst_35 = arith.constant 0.000000e+00 : f32
    %102 = vector.shape_cast %98 : vector<8x1xi1> to vector<8x1xi1>
    %103 = vector.broadcast %102 : vector<8x1xi1> to vector<8x128xi1>
    %104 = vector.broadcast %cst_35 : f32 to vector<8x128xf32>
    %105 = arith.select %103, %101, %104 : vector<8x128xi1>, vector<8x128xf32>
    %106 = arith.index_cast %c1_i32 : i32 to index
    %c0_36 = arith.constant 0 : index
    %c0_37 = arith.constant 0 : index
    %107 = vector.load %arg5[%106, %c0_36, %c0_37] : memref<8x8x128xf32, #tpu.memory_space<vmem>>, vector<1x8x128xf32>
    %108 = vector.shape_cast %107 : vector<1x8x128xf32> to vector<8x128xf32>
    %109 = vector.shape_cast %105 : vector<8x128xf32> to vector<1x8x128xf32>
    tpu.vector_store %arg5[%106, %c0_36, %c0_37], %109 {strides = array<i32>} : memref<8x8x128xf32, #tpu.memory_space<vmem>>, vector<1x8x128xf32>,
    %c2_i32 = arith.constant 2 : i32
    %c8_i32_38 = arith.constant 8 : i32
    %110 = arith.muli %arg0, %c8_i32_38 : i32
    %111 = arith.addi %110, %c2_i32 : i32
    %112 = arith.index_cast %c2_i32 : i32 to index
    %c0_39 = arith.constant 0 : index
    %c0_40 = arith.constant 0 : index
    %c0_41 = arith.constant 0 : index
    %113 = vector.load %arg1[%112, %c0_39, %c0_40, %c0_41] : memref<8x3x8x128xf32, #tpu.memory_space<vmem>>, vector<1x3x8x128xf32>
    %114 = vector.shape_cast %113 : vector<1x3x8x128xf32> to vector<3x8x128xf32>
    %115 = vector.extract_strided_slice %114 {offsets = [0, 0, 0], sizes = [1, 8, 128], strides = [1, 1, 1]} : vector<3x8x128xf32> to vector<1x8x128xf32>
    %116 = vector.shape_cast %115 : vector<1x8x128xf32> to vector<8x128xf32>
    %117 = vector.extract_strided_slice %114 {offsets = [1, 0, 0], sizes = [1, 8, 128], strides = [1, 1, 1]} : vector<3x8x128xf32> to vector<1x8x128xf32>
    %118 = vector.shape_cast %117 : vector<1x8x128xf32> to vector<8x128xf32>
    %119 = vector.extract_strided_slice %114 {offsets = [2, 0, 0], sizes = [1, 8, 128], strides = [1, 1, 1]} : vector<3x8x128xf32> to vector<1x8x128xf32>
    %120 = vector.shape_cast %119 : vector<1x8x128xf32> to vector<8x128xf32>
    %cst_42 = arith.constant dense<0.000000e+00> : vector<8x128xf32>
    %121 = tpu.matmul %101, %5, %cst_42 {dimension_numbers = #tpu.dot_dimension_numbers<[1], [0], [0], [1], [0, 0, 1, 1], [], []>} : vector<8x128xf32>, vector<128x128xf32>, vector<8x128xf32> -> vector<8x128xf32>
    %122 = arith.addf %116, %121 : vector<8x128xf32>
    %123 = arith.negf %122 : vector<8x128xf32>
    %124 = math.exp %123 : vector<8x128xf32>
    %cst_43 = arith.constant 1.000000e+00 : f32
    %125 = vector.broadcast %cst_43 : f32 to vector<8x128xf32>
    %126 = arith.addf %125, %124 : vector<8x128xf32>
    %127 = arith.divf %125, %126 : vector<8x128xf32>
    %cst_44 = arith.constant dense<0.000000e+00> : vector<8x128xf32>
    %128 = tpu.matmul %101, %7, %cst_44 {dimension_numbers = #tpu.dot_dimension_numbers<[1], [0], [0], [1], [0, 0, 1, 1], [], []>} : vector<8x128xf32>, vector<128x128xf32>, vector<8x128xf32> -> vector<8x128xf32>
    %129 = arith.addf %118, %128 : vector<8x128xf32>
    %130 = arith.negf %129 : vector<8x128xf32>
    %131 = math.exp %130 : vector<8x128xf32>
    %cst_45 = arith.constant 1.000000e+00 : f32
    %132 = vector.broadcast %cst_45 : f32 to vector<8x128xf32>
    %133 = arith.addf %132, %131 : vector<8x128xf32>
    %134 = arith.divf %132, %133 : vector<8x128xf32>
    %cst_46 = arith.constant dense<0.000000e+00> : vector<8x128xf32>
    %135 = tpu.matmul %101, %9, %cst_46 {dimension_numbers = #tpu.dot_dimension_numbers<[1], [0], [0], [1], [0, 0, 1, 1], [], []>} : vector<8x128xf32>, vector<128x128xf32>, vector<8x128xf32> -> vector<8x128xf32>
    %136 = vector.broadcast %10 : vector<1x128xf32> to vector<8x128xf32>
    %137 = arith.addf %135, %136 : vector<8x128xf32>
    %138 = arith.mulf %127, %137 : vector<8x128xf32>
    %139 = arith.addf %120, %138 : vector<8x128xf32>
    %140 = math.tanh %139 : vector<8x128xf32>
    %cst_47 = arith.constant 1.000000e+00 : f32
    %141 = vector.broadcast %cst_47 : f32 to vector<8x128xf32>
    %142 = arith.subf %141, %134 : vector<8x128xf32>
    %143 = arith.mulf %142, %140 : vector<8x128xf32>
    %144 = arith.mulf %134, %101 : vector<8x128xf32>
    %145 = arith.addf %143, %144 : vector<8x128xf32>
    %146 = vector.broadcast %111 : i32 to vector<8x1xi32>
    %147 = arith.cmpi slt, %146, %3 : vector<8x1xi32>
    %148 = vector.shape_cast %147 : vector<8x1xi1> to vector<8x1xi1>
    %149 = vector.broadcast %148 : vector<8x1xi1> to vector<8x128xi1>
    %150 = arith.select %149, %145, %101 : vector<8x128xi1>, vector<8x128xf32>
    %cst_48 = arith.constant 0.000000e+00 : f32
    %151 = vector.shape_cast %147 : vector<8x1xi1> to vector<8x1xi1>
    %152 = vector.broadcast %151 : vector<8x1xi1> to vector<8x128xi1>
    %153 = vector.broadcast %cst_48 : f32 to vector<8x128xf32>
    %154 = arith.select %152, %150, %153 : vector<8x128xi1>, vector<8x128xf32>
    %155 = arith.index_cast %c2_i32 : i32 to index
    %c0_49 = arith.constant 0 : index
    %c0_50 = arith.constant 0 : index
    %156 = vector.load %arg5[%155, %c0_49, %c0_50] : memref<8x8x128xf32, #tpu.memory_space<vmem>>, vector<1x8x128xf32>
    %157 = vector.shape_cast %156 : vector<1x8x128xf32> to vector<8x128xf32>
    %158 = vector.shape_cast %154 : vector<8x128xf32> to vector<1x8x128xf32>
    tpu.vector_store %arg5[%155, %c0_49, %c0_50], %158 {strides = array<i32>} : memref<8x8x128xf32, #tpu.memory_space<vmem>>, vector<1x8x128xf32>,
    %c3_i32 = arith.constant 3 : i32
    %c8_i32_51 = arith.constant 8 : i32
    %159 = arith.muli %arg0, %c8_i32_51 : i32
    %160 = arith.addi %159, %c3_i32 : i32
    %161 = arith.index_cast %c3_i32 : i32 to index
    %c0_52 = arith.constant 0 : index
    %c0_53 = arith.constant 0 : index
    %c0_54 = arith.constant 0 : index
    %162 = vector.load %arg1[%161, %c0_52, %c0_53, %c0_54] : memref<8x3x8x128xf32, #tpu.memory_space<vmem>>, vector<1x3x8x128xf32>
    %163 = vector.shape_cast %162 : vector<1x3x8x128xf32> to vector<3x8x128xf32>
    %164 = vector.extract_strided_slice %163 {offsets = [0, 0, 0], sizes = [1, 8, 128], strides = [1, 1, 1]} : vector<3x8x128xf32> to vector<1x8x128xf32>
    %165 = vector.shape_cast %164 : vector<1x8x128xf32> to vector<8x128xf32>
    %166 = vector.extract_strided_slice %163 {offsets = [1, 0, 0], sizes = [1, 8, 128], strides = [1, 1, 1]} : vector<3x8x128xf32> to vector<1x8x128xf32>
    %167 = vector.shape_cast %166 : vector<1x8x128xf32> to vector<8x128xf32>
    %168 = vector.extract_strided_slice %163 {offsets = [2, 0, 0], sizes = [1, 8, 128], strides = [1, 1, 1]} : vector<3x8x128xf32> to vector<1x8x128xf32>
    %169 = vector.shape_cast %168 : vector<1x8x128xf32> to vector<8x128xf32>
    %cst_55 = arith.constant dense<0.000000e+00> : vector<8x128xf32>
    %170 = tpu.matmul %150, %5, %cst_55 {dimension_numbers = #tpu.dot_dimension_numbers<[1], [0], [0], [1], [0, 0, 1, 1], [], []>} : vector<8x128xf32>, vector<128x128xf32>, vector<8x128xf32> -> vector<8x128xf32>
    %171 = arith.addf %165, %170 : vector<8x128xf32>
    %172 = arith.negf %171 : vector<8x128xf32>
    %173 = math.exp %172 : vector<8x128xf32>
    %cst_56 = arith.constant 1.000000e+00 : f32
    %174 = vector.broadcast %cst_56 : f32 to vector<8x128xf32>
    %175 = arith.addf %174, %173 : vector<8x128xf32>
    %176 = arith.divf %174, %175 : vector<8x128xf32>
    %cst_57 = arith.constant dense<0.000000e+00> : vector<8x128xf32>
    %177 = tpu.matmul %150, %7, %cst_57 {dimension_numbers = #tpu.dot_dimension_numbers<[1], [0], [0], [1], [0, 0, 1, 1], [], []>} : vector<8x128xf32>, vector<128x128xf32>, vector<8x128xf32> -> vector<8x128xf32>
    %178 = arith.addf %167, %177 : vector<8x128xf32>
    %179 = arith.negf %178 : vector<8x128xf32>
    %180 = math.exp %179 : vector<8x128xf32>
    %cst_58 = arith.constant 1.000000e+00 : f32
    %181 = vector.broadcast %cst_58 : f32 to vector<8x128xf32>
    %182 = arith.addf %181, %180 : vector<8x128xf32>
    %183 = arith.divf %181, %182 : vector<8x128xf32>
    %cst_59 = arith.constant dense<0.000000e+00> : vector<8x128xf32>
    %184 = tpu.matmul %150, %9, %cst_59 {dimension_numbers = #tpu.dot_dimension_numbers<[1], [0], [0], [1], [0, 0, 1, 1], [], []>} : vector<8x128xf32>, vector<128x128xf32>, vector<8x128xf32> -> vector<8x128xf32>
    %185 = vector.broadcast %10 : vector<1x128xf32> to vector<8x128xf32>
    %186 = arith.addf %184, %185 : vector<8x128xf32>
    %187 = arith.mulf %176, %186 : vector<8x128xf32>
    %188 = arith.addf %169, %187 : vector<8x128xf32>
    %189 = math.tanh %188 : vector<8x128xf32>
    %cst_60 = arith.constant 1.000000e+00 : f32
    %190 = vector.broadcast %cst_60 : f32 to vector<8x128xf32>
    %191 = arith.subf %190, %183 : vector<8x128xf32>
    %192 = arith.mulf %191, %189 : vector<8x128xf32>
    %193 = arith.mulf %183, %150 : vector<8x128xf32>
    %194 = arith.addf %192, %193 : vector<8x128xf32>
    %195 = vector.broadcast %160 : i32 to vector<8x1xi32>
    %196 = arith.cmpi slt, %195, %3 : vector<8x1xi32>
    %197 = vector.shape_cast %196 : vector<8x1xi1> to vector<8x1xi1>
    %198 = vector.broadcast %197 : vector<8x1xi1> to vector<8x128xi1>
    %199 = arith.select %198, %194, %150 : vector<8x128xi1>, vector<8x128xf32>
    %cst_61 = arith.constant 0.000000e+00 : f32
    %200 = vector.shape_cast %196 : vector<8x1xi1> to vector<8x1xi1>
    %201 = vector.broadcast %200 : vector<8x1xi1> to vector<8x128xi1>
    %202 = vector.broadcast %cst_61 : f32 to vector<8x128xf32>
    %203 = arith.select %201, %199, %202 : vector<8x128xi1>, vector<8x128xf32>
    %204 = arith.index_cast %c3_i32 : i32 to index
    %c0_62 = arith.constant 0 : index
    %c0_63 = arith.constant 0 : index
    %205 = vector.load %arg5[%204, %c0_62, %c0_63] : memref<8x8x128xf32, #tpu.memory_space<vmem>>, vector<1x8x128xf32>
    %206 = vector.shape_cast %205 : vector<1x8x128xf32> to vector<8x128xf32>
    %207 = vector.shape_cast %203 : vector<8x128xf32> to vector<1x8x128xf32>
    tpu.vector_store %arg5[%204, %c0_62, %c0_63], %207 {strides = array<i32>} : memref<8x8x128xf32, #tpu.memory_space<vmem>>, vector<1x8x128xf32>,
    %c4_i32 = arith.constant 4 : i32
    %c8_i32_64 = arith.constant 8 : i32
    %208 = arith.muli %arg0, %c8_i32_64 : i32
    %209 = arith.addi %208, %c4_i32 : i32
    %210 = arith.index_cast %c4_i32 : i32 to index
    %c0_65 = arith.constant 0 : index
    %c0_66 = arith.constant 0 : index
    %c0_67 = arith.constant 0 : index
    %211 = vector.load %arg1[%210, %c0_65, %c0_66, %c0_67] : memref<8x3x8x128xf32, #tpu.memory_space<vmem>>, vector<1x3x8x128xf32>
    %212 = vector.shape_cast %211 : vector<1x3x8x128xf32> to vector<3x8x128xf32>
    %213 = vector.extract_strided_slice %212 {offsets = [0, 0, 0], sizes = [1, 8, 128], strides = [1, 1, 1]} : vector<3x8x128xf32> to vector<1x8x128xf32>
    %214 = vector.shape_cast %213 : vector<1x8x128xf32> to vector<8x128xf32>
    %215 = vector.extract_strided_slice %212 {offsets = [1, 0, 0], sizes = [1, 8, 128], strides = [1, 1, 1]} : vector<3x8x128xf32> to vector<1x8x128xf32>
    %216 = vector.shape_cast %215 : vector<1x8x128xf32> to vector<8x128xf32>
    %217 = vector.extract_strided_slice %212 {offsets = [2, 0, 0], sizes = [1, 8, 128], strides = [1, 1, 1]} : vector<3x8x128xf32> to vector<1x8x128xf32>
    %218 = vector.shape_cast %217 : vector<1x8x128xf32> to vector<8x128xf32>
    %cst_68 = arith.constant dense<0.000000e+00> : vector<8x128xf32>
    %219 = tpu.matmul %199, %5, %cst_68 {dimension_numbers = #tpu.dot_dimension_numbers<[1], [0], [0], [1], [0, 0, 1, 1], [], []>} : vector<8x128xf32>, vector<128x128xf32>, vector<8x128xf32> -> vector<8x128xf32>
    %220 = arith.addf %214, %219 : vector<8x128xf32>
    %221 = arith.negf %220 : vector<8x128xf32>
    %222 = math.exp %221 : vector<8x128xf32>
    %cst_69 = arith.constant 1.000000e+00 : f32
    %223 = vector.broadcast %cst_69 : f32 to vector<8x128xf32>
    %224 = arith.addf %223, %222 : vector<8x128xf32>
    %225 = arith.divf %223, %224 : vector<8x128xf32>
    %cst_70 = arith.constant dense<0.000000e+00> : vector<8x128xf32>
    %226 = tpu.matmul %199, %7, %cst_70 {dimension_numbers = #tpu.dot_dimension_numbers<[1], [0], [0], [1], [0, 0, 1, 1], [], []>} : vector<8x128xf32>, vector<128x128xf32>, vector<8x128xf32> -> vector<8x128xf32>
    %227 = arith.addf %216, %226 : vector<8x128xf32>
    %228 = arith.negf %227 : vector<8x128xf32>
    %229 = math.exp %228 : vector<8x128xf32>
    %cst_71 = arith.constant 1.000000e+00 : f32
    %230 = vector.broadcast %cst_71 : f32 to vector<8x128xf32>
    %231 = arith.addf %230, %229 : vector<8x128xf32>
    %232 = arith.divf %230, %231 : vector<8x128xf32>
    %cst_72 = arith.constant dense<0.000000e+00> : vector<8x128xf32>
    %233 = tpu.matmul %199, %9, %cst_72 {dimension_numbers = #tpu.dot_dimension_numbers<[1], [0], [0], [1], [0, 0, 1, 1], [], []>} : vector<8x128xf32>, vector<128x128xf32>, vector<8x128xf32> -> vector<8x128xf32>
    %234 = vector.broadcast %10 : vector<1x128xf32> to vector<8x128xf32>
    %235 = arith.addf %233, %234 : vector<8x128xf32>
    %236 = arith.mulf %225, %235 : vector<8x128xf32>
    %237 = arith.addf %218, %236 : vector<8x128xf32>
    %238 = math.tanh %237 : vector<8x128xf32>
    %cst_73 = arith.constant 1.000000e+00 : f32
    %239 = vector.broadcast %cst_73 : f32 to vector<8x128xf32>
    %240 = arith.subf %239, %232 : vector<8x128xf32>
    %241 = arith.mulf %240, %238 : vector<8x128xf32>
    %242 = arith.mulf %232, %199 : vector<8x128xf32>
    %243 = arith.addf %241, %242 : vector<8x128xf32>
    %244 = vector.broadcast %209 : i32 to vector<8x1xi32>
    %245 = arith.cmpi slt, %244, %3 : vector<8x1xi32>
    %246 = vector.shape_cast %245 : vector<8x1xi1> to vector<8x1xi1>
    %247 = vector.broadcast %246 : vector<8x1xi1> to vector<8x128xi1>
    %248 = arith.select %247, %243, %199 : vector<8x128xi1>, vector<8x128xf32>
    %cst_74 = arith.constant 0.000000e+00 : f32
    %249 = vector.shape_cast %245 : vector<8x1xi1> to vector<8x1xi1>
    %250 = vector.broadcast %249 : vector<8x1xi1> to vector<8x128xi1>
    %251 = vector.broadcast %cst_74 : f32 to vector<8x128xf32>
    %252 = arith.select %250, %248, %251 : vector<8x128xi1>, vector<8x128xf32>
    %253 = arith.index_cast %c4_i32 : i32 to index
    %c0_75 = arith.constant 0 : index
    %c0_76 = arith.constant 0 : index
    %254 = vector.load %arg5[%253, %c0_75, %c0_76] : memref<8x8x128xf32, #tpu.memory_space<vmem>>, vector<1x8x128xf32>
    %255 = vector.shape_cast %254 : vector<1x8x128xf32> to vector<8x128xf32>
    %256 = vector.shape_cast %252 : vector<8x128xf32> to vector<1x8x128xf32>
    tpu.vector_store %arg5[%253, %c0_75, %c0_76], %256 {strides = array<i32>} : memref<8x8x128xf32, #tpu.memory_space<vmem>>, vector<1x8x128xf32>,
    %c5_i32 = arith.constant 5 : i32
    %c8_i32_77 = arith.constant 8 : i32
    %257 = arith.muli %arg0, %c8_i32_77 : i32
    %258 = arith.addi %257, %c5_i32 : i32
    %259 = arith.index_cast %c5_i32 : i32 to index
    %c0_78 = arith.constant 0 : index
    %c0_79 = arith.constant 0 : index
    %c0_80 = arith.constant 0 : index
    %260 = vector.load %arg1[%259, %c0_78, %c0_79, %c0_80] : memref<8x3x8x128xf32, #tpu.memory_space<vmem>>, vector<1x3x8x128xf32>
    %261 = vector.shape_cast %260 : vector<1x3x8x128xf32> to vector<3x8x128xf32>
    %262 = vector.extract_strided_slice %261 {offsets = [0, 0, 0], sizes = [1, 8, 128], strides = [1, 1, 1]} : vector<3x8x128xf32> to vector<1x8x128xf32>
    %263 = vector.shape_cast %262 : vector<1x8x128xf32> to vector<8x128xf32>
    %264 = vector.extract_strided_slice %261 {offsets = [1, 0, 0], sizes = [1, 8, 128], strides = [1, 1, 1]} : vector<3x8x128xf32> to vector<1x8x128xf32>
    %265 = vector.shape_cast %264 : vector<1x8x128xf32> to vector<8x128xf32>
    %266 = vector.extract_strided_slice %261 {offsets = [2, 0, 0], sizes = [1, 8, 128], strides = [1, 1, 1]} : vector<3x8x128xf32> to vector<1x8x128xf32>
    %267 = vector.shape_cast %266 : vector<1x8x128xf32> to vector<8x128xf32>
    %cst_81 = arith.constant dense<0.000000e+00> : vector<8x128xf32>
    %268 = tpu.matmul %248, %5, %cst_81 {dimension_numbers = #tpu.dot_dimension_numbers<[1], [0], [0], [1], [0, 0, 1, 1], [], []>} : vector<8x128xf32>, vector<128x128xf32>, vector<8x128xf32> -> vector<8x128xf32>
    %269 = arith.addf %263, %268 : vector<8x128xf32>
    %270 = arith.negf %269 : vector<8x128xf32>
    %271 = math.exp %270 : vector<8x128xf32>
    %cst_82 = arith.constant 1.000000e+00 : f32
    %272 = vector.broadcast %cst_82 : f32 to vector<8x128xf32>
    %273 = arith.addf %272, %271 : vector<8x128xf32>
    %274 = arith.divf %272, %273 : vector<8x128xf32>
    %cst_83 = arith.constant dense<0.000000e+00> : vector<8x128xf32>
    %275 = tpu.matmul %248, %7, %cst_83 {dimension_numbers = #tpu.dot_dimension_numbers<[1], [0], [0], [1], [0, 0, 1, 1], [], []>} : vector<8x128xf32>, vector<128x128xf32>, vector<8x128xf32> -> vector<8x128xf32>
    %276 = arith.addf %265, %275 : vector<8x128xf32>
    %277 = arith.negf %276 : vector<8x128xf32>
    %278 = math.exp %277 : vector<8x128xf32>
    %cst_84 = arith.constant 1.000000e+00 : f32
    %279 = vector.broadcast %cst_84 : f32 to vector<8x128xf32>
    %280 = arith.addf %279, %278 : vector<8x128xf32>
    %281 = arith.divf %279, %280 : vector<8x128xf32>
    %cst_85 = arith.constant dense<0.000000e+00> : vector<8x128xf32>
    %282 = tpu.matmul %248, %9, %cst_85 {dimension_numbers = #tpu.dot_dimension_numbers<[1], [0], [0], [1], [0, 0, 1, 1], [], []>} : vector<8x128xf32>, vector<128x128xf32>, vector<8x128xf32> -> vector<8x128xf32>
    %283 = vector.broadcast %10 : vector<1x128xf32> to vector<8x128xf32>
    %284 = arith.addf %282, %283 : vector<8x128xf32>
    %285 = arith.mulf %274, %284 : vector<8x128xf32>
    %286 = arith.addf %267, %285 : vector<8x128xf32>
    %287 = math.tanh %286 : vector<8x128xf32>
    %cst_86 = arith.constant 1.000000e+00 : f32
    %288 = vector.broadcast %cst_86 : f32 to vector<8x128xf32>
    %289 = arith.subf %288, %281 : vector<8x128xf32>
    %290 = arith.mulf %289, %287 : vector<8x128xf32>
    %291 = arith.mulf %281, %248 : vector<8x128xf32>
    %292 = arith.addf %290, %291 : vector<8x128xf32>
    %293 = vector.broadcast %258 : i32 to vector<8x1xi32>
    %294 = arith.cmpi slt, %293, %3 : vector<8x1xi32>
    %295 = vector.shape_cast %294 : vector<8x1xi1> to vector<8x1xi1>
    %296 = vector.broadcast %295 : vector<8x1xi1> to vector<8x128xi1>
    %297 = arith.select %296, %292, %248 : vector<8x128xi1>, vector<8x128xf32>
    %cst_87 = arith.constant 0.000000e+00 : f32
    %298 = vector.shape_cast %294 : vector<8x1xi1> to vector<8x1xi1>
    %299 = vector.broadcast %298 : vector<8x1xi1> to vector<8x128xi1>
    %300 = vector.broadcast %cst_87 : f32 to vector<8x128xf32>
    %301 = arith.select %299, %297, %300 : vector<8x128xi1>, vector<8x128xf32>
    %302 = arith.index_cast %c5_i32 : i32 to index
    %c0_88 = arith.constant 0 : index
    %c0_89 = arith.constant 0 : index
    %303 = vector.load %arg5[%302, %c0_88, %c0_89] : memref<8x8x128xf32, #tpu.memory_space<vmem>>, vector<1x8x128xf32>
    %304 = vector.shape_cast %303 : vector<1x8x128xf32> to vector<8x128xf32>
    %305 = vector.shape_cast %301 : vector<8x128xf32> to vector<1x8x128xf32>
    tpu.vector_store %arg5[%302, %c0_88, %c0_89], %305 {strides = array<i32>} : memref<8x8x128xf32, #tpu.memory_space<vmem>>, vector<1x8x128xf32>,
    %c6_i32 = arith.constant 6 : i32
    %c8_i32_90 = arith.constant 8 : i32
    %306 = arith.muli %arg0, %c8_i32_90 : i32
    %307 = arith.addi %306, %c6_i32 : i32
    %308 = arith.index_cast %c6_i32 : i32 to index
    %c0_91 = arith.constant 0 : index
    %c0_92 = arith.constant 0 : index
    %c0_93 = arith.constant 0 : index
    %309 = vector.load %arg1[%308, %c0_91, %c0_92, %c0_93] : memref<8x3x8x128xf32, #tpu.memory_space<vmem>>, vector<1x3x8x128xf32>
    %310 = vector.shape_cast %309 : vector<1x3x8x128xf32> to vector<3x8x128xf32>
    %311 = vector.extract_strided_slice %310 {offsets = [0, 0, 0], sizes = [1, 8, 128], strides = [1, 1, 1]} : vector<3x8x128xf32> to vector<1x8x128xf32>
    %312 = vector.shape_cast %311 : vector<1x8x128xf32> to vector<8x128xf32>
    %313 = vector.extract_strided_slice %310 {offsets = [1, 0, 0], sizes = [1, 8, 128], strides = [1, 1, 1]} : vector<3x8x128xf32> to vector<1x8x128xf32>
    %314 = vector.shape_cast %313 : vector<1x8x128xf32> to vector<8x128xf32>
    %315 = vector.extract_strided_slice %310 {offsets = [2, 0, 0], sizes = [1, 8, 128], strides = [1, 1, 1]} : vector<3x8x128xf32> to vector<1x8x128xf32>
    %316 = vector.shape_cast %315 : vector<1x8x128xf32> to vector<8x128xf32>
    %cst_94 = arith.constant dense<0.000000e+00> : vector<8x128xf32>
    %317 = tpu.matmul %297, %5, %cst_94 {dimension_numbers = #tpu.dot_dimension_numbers<[1], [0], [0], [1], [0, 0, 1, 1], [], []>} : vector<8x128xf32>, vector<128x128xf32>, vector<8x128xf32> -> vector<8x128xf32>
    %318 = arith.addf %312, %317 : vector<8x128xf32>
    %319 = arith.negf %318 : vector<8x128xf32>
    %320 = math.exp %319 : vector<8x128xf32>
    %cst_95 = arith.constant 1.000000e+00 : f32
    %321 = vector.broadcast %cst_95 : f32 to vector<8x128xf32>
    %322 = arith.addf %321, %320 : vector<8x128xf32>
    %323 = arith.divf %321, %322 : vector<8x128xf32>
    %cst_96 = arith.constant dense<0.000000e+00> : vector<8x128xf32>
    %324 = tpu.matmul %297, %7, %cst_96 {dimension_numbers = #tpu.dot_dimension_numbers<[1], [0], [0], [1], [0, 0, 1, 1], [], []>} : vector<8x128xf32>, vector<128x128xf32>, vector<8x128xf32> -> vector<8x128xf32>
    %325 = arith.addf %314, %324 : vector<8x128xf32>
    %326 = arith.negf %325 : vector<8x128xf32>
    %327 = math.exp %326 : vector<8x128xf32>
    %cst_97 = arith.constant 1.000000e+00 : f32
    %328 = vector.broadcast %cst_97 : f32 to vector<8x128xf32>
    %329 = arith.addf %328, %327 : vector<8x128xf32>
    %330 = arith.divf %328, %329 : vector<8x128xf32>
    %cst_98 = arith.constant dense<0.000000e+00> : vector<8x128xf32>
    %331 = tpu.matmul %297, %9, %cst_98 {dimension_numbers = #tpu.dot_dimension_numbers<[1], [0], [0], [1], [0, 0, 1, 1], [], []>} : vector<8x128xf32>, vector<128x128xf32>, vector<8x128xf32> -> vector<8x128xf32>
    %332 = vector.broadcast %10 : vector<1x128xf32> to vector<8x128xf32>
    %333 = arith.addf %331, %332 : vector<8x128xf32>
    %334 = arith.mulf %323, %333 : vector<8x128xf32>
    %335 = arith.addf %316, %334 : vector<8x128xf32>
    %336 = math.tanh %335 : vector<8x128xf32>
    %cst_99 = arith.constant 1.000000e+00 : f32
    %337 = vector.broadcast %cst_99 : f32 to vector<8x128xf32>
    %338 = arith.subf %337, %330 : vector<8x128xf32>
    %339 = arith.mulf %338, %336 : vector<8x128xf32>
    %340 = arith.mulf %330, %297 : vector<8x128xf32>
    %341 = arith.addf %339, %340 : vector<8x128xf32>
    %342 = vector.broadcast %307 : i32 to vector<8x1xi32>
    %343 = arith.cmpi slt, %342, %3 : vector<8x1xi32>
    %344 = vector.shape_cast %343 : vector<8x1xi1> to vector<8x1xi1>
    %345 = vector.broadcast %344 : vector<8x1xi1> to vector<8x128xi1>
    %346 = arith.select %345, %341, %297 : vector<8x128xi1>, vector<8x128xf32>
    %cst_100 = arith.constant 0.000000e+00 : f32
    %347 = vector.shape_cast %343 : vector<8x1xi1> to vector<8x1xi1>
    %348 = vector.broadcast %347 : vector<8x1xi1> to vector<8x128xi1>
    %349 = vector.broadcast %cst_100 : f32 to vector<8x128xf32>
    %350 = arith.select %348, %346, %349 : vector<8x128xi1>, vector<8x128xf32>
    %351 = arith.index_cast %c6_i32 : i32 to index
    %c0_101 = arith.constant 0 : index
    %c0_102 = arith.constant 0 : index
    %352 = vector.load %arg5[%351, %c0_101, %c0_102] : memref<8x8x128xf32, #tpu.memory_space<vmem>>, vector<1x8x128xf32>
    %353 = vector.shape_cast %352 : vector<1x8x128xf32> to vector<8x128xf32>
    %354 = vector.shape_cast %350 : vector<8x128xf32> to vector<1x8x128xf32>
    tpu.vector_store %arg5[%351, %c0_101, %c0_102], %354 {strides = array<i32>} : memref<8x8x128xf32, #tpu.memory_space<vmem>>, vector<1x8x128xf32>,
    %c7_i32 = arith.constant 7 : i32
    %c8_i32_103 = arith.constant 8 : i32
    %355 = arith.muli %arg0, %c8_i32_103 : i32
    %356 = arith.addi %355, %c7_i32 : i32
    %357 = arith.index_cast %c7_i32 : i32 to index
    %c0_104 = arith.constant 0 : index
    %c0_105 = arith.constant 0 : index
    %c0_106 = arith.constant 0 : index
    %358 = vector.load %arg1[%357, %c0_104, %c0_105, %c0_106] : memref<8x3x8x128xf32, #tpu.memory_space<vmem>>, vector<1x3x8x128xf32>
    %359 = vector.shape_cast %358 : vector<1x3x8x128xf32> to vector<3x8x128xf32>
    %360 = vector.extract_strided_slice %359 {offsets = [0, 0, 0], sizes = [1, 8, 128], strides = [1, 1, 1]} : vector<3x8x128xf32> to vector<1x8x128xf32>
    %361 = vector.shape_cast %360 : vector<1x8x128xf32> to vector<8x128xf32>
    %362 = vector.extract_strided_slice %359 {offsets = [1, 0, 0], sizes = [1, 8, 128], strides = [1, 1, 1]} : vector<3x8x128xf32> to vector<1x8x128xf32>
    %363 = vector.shape_cast %362 : vector<1x8x128xf32> to vector<8x128xf32>
    %364 = vector.extract_strided_slice %359 {offsets = [2, 0, 0], sizes = [1, 8, 128], strides = [1, 1, 1]} : vector<3x8x128xf32> to vector<1x8x128xf32>
    %365 = vector.shape_cast %364 : vector<1x8x128xf32> to vector<8x128xf32>
    %cst_107 = arith.constant dense<0.000000e+00> : vector<8x128xf32>
    %366 = tpu.matmul %346, %5, %cst_107 {dimension_numbers = #tpu.dot_dimension_numbers<[1], [0], [0], [1], [0, 0, 1, 1], [], []>} : vector<8x128xf32>, vector<128x128xf32>, vector<8x128xf32> -> vector<8x128xf32>
    %367 = arith.addf %361, %366 : vector<8x128xf32>
    %368 = arith.negf %367 : vector<8x128xf32>
    %369 = math.exp %368 : vector<8x128xf32>
    %cst_108 = arith.constant 1.000000e+00 : f32
    %370 = vector.broadcast %cst_108 : f32 to vector<8x128xf32>
    %371 = arith.addf %370, %369 : vector<8x128xf32>
    %372 = arith.divf %370, %371 : vector<8x128xf32>
    %cst_109 = arith.constant dense<0.000000e+00> : vector<8x128xf32>
    %373 = tpu.matmul %346, %7, %cst_109 {dimension_numbers = #tpu.dot_dimension_numbers<[1], [0], [0], [1], [0, 0, 1, 1], [], []>} : vector<8x128xf32>, vector<128x128xf32>, vector<8x128xf32> -> vector<8x128xf32>
    %374 = arith.addf %363, %373 : vector<8x128xf32>
    %375 = arith.negf %374 : vector<8x128xf32>
    %376 = math.exp %375 : vector<8x128xf32>
    %cst_110 = arith.constant 1.000000e+00 : f32
    %377 = vector.broadcast %cst_110 : f32 to vector<8x128xf32>
    %378 = arith.addf %377, %376 : vector<8x128xf32>
    %379 = arith.divf %377, %378 : vector<8x128xf32>
    %cst_111 = arith.constant dense<0.000000e+00> : vector<8x128xf32>
    %380 = tpu.matmul %346, %9, %cst_111 {dimension_numbers = #tpu.dot_dimension_numbers<[1], [0], [0], [1], [0, 0, 1, 1], [], []>} : vector<8x128xf32>, vector<128x128xf32>, vector<8x128xf32> -> vector<8x128xf32>
    %381 = vector.broadcast %10 : vector<1x128xf32> to vector<8x128xf32>
    %382 = arith.addf %380, %381 : vector<8x128xf32>
    %383 = arith.mulf %372, %382 : vector<8x128xf32>
    %384 = arith.addf %365, %383 : vector<8x128xf32>
    %385 = math.tanh %384 : vector<8x128xf32>
    %cst_112 = arith.constant 1.000000e+00 : f32
    %386 = vector.broadcast %cst_112 : f32 to vector<8x128xf32>
    %387 = arith.subf %386, %379 : vector<8x128xf32>
    %388 = arith.mulf %387, %385 : vector<8x128xf32>
    %389 = arith.mulf %379, %346 : vector<8x128xf32>
    %390 = arith.addf %388, %389 : vector<8x128xf32>
    %391 = vector.broadcast %356 : i32 to vector<8x1xi32>
    %392 = arith.cmpi slt, %391, %3 : vector<8x1xi32>
    %393 = vector.shape_cast %392 : vector<8x1xi1> to vector<8x1xi1>
    %394 = vector.broadcast %393 : vector<8x1xi1> to vector<8x128xi1>
    %395 = arith.select %394, %390, %346 : vector<8x128xi1>, vector<8x128xf32>
    %cst_113 = arith.constant 0.000000e+00 : f32
    %396 = vector.shape_cast %392 : vector<8x1xi1> to vector<8x1xi1>
    %397 = vector.broadcast %396 : vector<8x1xi1> to vector<8x128xi1>
    %398 = vector.broadcast %cst_113 : f32 to vector<8x128xf32>
    %399 = arith.select %397, %395, %398 : vector<8x128xi1>, vector<8x128xf32>
    %400 = arith.index_cast %c7_i32 : i32 to index
    %c0_114 = arith.constant 0 : index
    %c0_115 = arith.constant 0 : index
    %401 = vector.load %arg5[%400, %c0_114, %c0_115] : memref<8x8x128xf32, #tpu.memory_space<vmem>>, vector<1x8x128xf32>
    %402 = vector.shape_cast %401 : vector<1x8x128xf32> to vector<8x128xf32>
    %403 = vector.shape_cast %399 : vector<8x128xf32> to vector<1x8x128xf32>
    tpu.vector_store %arg5[%400, %c0_114, %c0_115], %403 {strides = array<i32>} : memref<8x8x128xf32, #tpu.memory_space<vmem>>, vector<1x8x128xf32>,
    %c8_i32_116 = arith.constant 8 : i32
    %c0_117 = arith.constant 0 : index
    %c0_118 = arith.constant 0 : index
    %404 = vector.load %arg6[%c0_117, %c0_118] : memref<8x128xf32, #tpu.memory_space<vmem>>, vector<8x128xf32>
    tpu.vector_store %arg6[%c0_117, %c0_118], %395 {strides = array<i32>} : memref<8x128xf32, #tpu.memory_space<vmem>>, vector<8x128xf32>,
    return
  }
  func.func @transform_0(%arg0: i32) -> (i32, i32, i32, i32) {
    %c0_i32 = arith.constant 0 : i32
    %c0_i32_0 = arith.constant 0 : i32
    %c0_i32_1 = arith.constant 0 : i32
    %c0_i32_2 = arith.constant 0 : i32
    return %arg0, %c0_i32, %c0_i32_0, %c0_i32_1 : i32, i32, i32, i32
  }
  func.func @transform_1(%arg0: i32) -> (i32, i32) {
    %c0_i32 = arith.constant 0 : i32
    %c0_i32_0 = arith.constant 0 : i32
    %c0_i32_1 = arith.constant 0 : i32
    return %c0_i32, %c0_i32_0 : i32, i32
  }
  func.func @transform_2(%arg0: i32) -> (i32, i32, i32) {
    %c0_i32 = arith.constant 0 : i32
    %c0_i32_0 = arith.constant 0 : i32
    %c0_i32_1 = arith.constant 0 : i32
    %c0_i32_2 = arith.constant 0 : i32
    return %c0_i32, %c0_i32_0, %c0_i32_1 : i32, i32, i32
  }
  func.func @transform_3(%arg0: i32) -> (i32, i32) {
    %c0_i32 = arith.constant 0 : i32
    %c0_i32_0 = arith.constant 0 : i32
    %c0_i32_1 = arith.constant 0 : i32
    return %c0_i32, %c0_i32_0 : i32, i32
  }
  func.func @transform_4(%arg0: i32) -> (i32, i32, i32) {
    %c0_i32 = arith.constant 0 : i32
    %c0_i32_0 = arith.constant 0 : i32
    %c0_i32_1 = arith.constant 0 : i32
    return %arg0, %c0_i32, %c0_i32_0 : i32, i32, i32
  }
}

</mosaic_0001>

<bundles_post_ra>
// kernel: tpu_custom_call.1
= control target key start
LH: loop header
LB: loop body
LE: loop exit
PB: predicated region body
PF: predicated region fallthrough
CT: control target
= control target key end

     0   :  { %9 = vsyncpa [#allocation4], 0  ;;  %s4750_s0 = inlined_call_operand.hbm [shape: f32[8,3,8,128], index: 0, kind: input, shape index: {}]   ;;  %s4751_s1 = inlined_call_operand.vmem [shape: s32[8,1], index: 1, kind: input, shape index: {}]   ;;  %s4752_s2 = inlined_call_operand.hbm [shape: f32[3,128,128], index: 2, kind: input, shape index: {}]   ;;  %s4753_s3 = inlined_call_operand.vmem [shape: f32[1,128], index: 3, kind: input, shape index: {}]   ;;  %s4754_s4 = inlined_call_operand.hbm [shape: f32[8,8,128], index: 4, kind: output, shape index: {}]  }
   0x1   :  { %10 = vsyncpa [#allocation7], 0 }
   0x2   :  { %11 = vsyncpa [#allocation5], 0  ;;  %s3584_s15 = smov [#allocation3]  }
   0x3   :  { %s17_s16 = sshll.u32 %s3584_s15, 4  ;;  %s18_s16 = int_to_ptr.vmem [resolvable:$true] %s17_s16 }
   0x4   :  { %s3526_s17 = scalar_lea.vmem %s18_s16, 3072  ;;  %p3531_p1 = scmp.lt.s32.totalorder %s18_s16, %s18_s16 }
   0x5   :  { %p3527_p0 = scmp.ne.s32.totalorder %s18_s16, %s3526_s17  ;;  %p3532_p2 = scmp.lt.s32.totalorder %s3526_s17, %s3526_s17 }
   0x7   :  { %p3533_p3 = por %p3532_p2, %p3531_p1 }
   0x9   :  { %p3534_p4 = pnand %p3533_p3, %p3527_p0 }
   0xb   :  { %3537 = shalt.err (!%p3534_p4)
}
   0xc   :  { %s3585_s18 = smov 128   ;;  %s3586_s19 = smov 8  }
   0xd   :  { %23 = dma.hbm_to_vmem [thread:$0]  %s4750_s0, 3072, %s18_s16, [#allocation4], %s3585_s18, %s3585_s18, %s3586_s19  }
   0xe   :  { %s3587_s22 = smov [#allocation6]  }
   0xf   :  { %s31_s23 = sshll.u32 %s3587_s22, 4  ;;  %s32_s23 = int_to_ptr.vmem [resolvable:$true] %s31_s23 }
  0x10   :  { %s3546_s24 = scalar_lea.vmem %s32_s23, 6144  ;;  %p3551_p6 = scmp.lt.s32.totalorder %s32_s23, %s32_s23 }
  0x11   :  { %p3547_p5 = scmp.ne.s32.totalorder %s32_s23, %s3546_s24  ;;  %p3552_p7 = scmp.lt.s32.totalorder %s3546_s24, %s3546_s24 }
  0x13   :  { %p3553_p8 = por %p3552_p7, %p3551_p6 }
  0x15   :  { %p3554_p9 = pnand %p3553_p8, %p3547_p5 }
  0x17   :  { %3557 = shalt.err (!%p3554_p9)
}
  0x18   :  { %37 = dma.hbm_to_vmem [thread:$0]  %s4752_s2, 6144, %s32_s23, [#allocation7], %s3585_s18, %s3585_s18, %s3586_s19  }
  0x19   :  { %3578 = dma.done.wait [#allocation4], 3072  }
  0x1a   :  { %3579 = vsyncadd [#allocation4], 4294964224 }
  0x1b   :  { %3580 = dma.done.wait [#allocation7], 6144  }
  0x1c   :  { %3581 = vsyncadd [#allocation7], 4294961152  ;;  %v4757_v0 = vmov 0.0   ;;  %vm3589_vm0 = vmmov 0   ;;  %v4755_v1 = vmov 0   ;;  %v3637_v2 = vld [vmem:[#allocation6 + $0x78] sm:$0xff] }
  0x1d   :  { %2539 = vmatprep.subr.mxu0 %v4757_v0  ;;  %2574 = vmatprep.subr.mxu1 %v4757_v0  ;;  %v3639_v3 = vld [vmem:[#allocation6 + $0x70] sm:$0xff]  ;;  %v3643_v4 = vld [vmem:[#allocation6 + $0x68] sm:$0xff]  ;;  %v3645_v5 = vld [vmem:[#allocation6 + $0xf8] sm:$0xff] }
  0x1e   :  { %2571 = vmatprep.mubr.msk.f32.mxu0 %vm3589_vm0, %v4757_v0  ;;  %2606 = vmatprep.mubr.msk.f32.mxu1 %vm3589_vm0, %v4757_v0  ;;  %v3649_v6 = vld [vmem:[#allocation6 + $0xf0] sm:$0xff]  ;;  %v3652_v7 = vld [vmem:[#allocation6 + $0x60] sm:$0xff]  ;;  %v3655_v8 = vld [vmem:[#allocation6 + $0xe8] sm:$0xff] }
  0x1f   :  { %3387 = vset.pattern.permute.xlu0 %v4755_v1  ;;  %3388 = vset.pattern.permute.xlu1 %v4755_v1  ;;  %v3660_v9 = vld [vmem:[#allocation6 + $0x58] sm:$0xff]  ;;  %v3663_v10 = vld [vmem:[#allocation6 + $0xe0] sm:$0xff]  ;;  %v3668_v11 = vld [vmem:[#allocation6 + $0x50] sm:$0xff] }
  0x20   :  { %2540 = vmatpush3.msra.mxu0 %v3637_v2  ;;  %2575 = vmatpush3.msra.mxu1 %v3645_v5  ;;  %v3671_v12 = vld [vmem:[#allocation6 + $0xd8] sm:$0xff]  ;;  %v3676_v13 = vld [vmem:[#allocation6 + $0x48] sm:$0xff]  ;;  %v3679_v14 = vld [vmem:[#allocation6 + $0xd0] sm:$0xff] }
  0x21   :  { %2541 = vmatprep.subr.mxu0 %v4757_v0  ;;  %2576 = vmatprep.subr.mxu1 %v4757_v0  ;;  %v3684_v15 = vld [vmem:[#allocation6 + $0x40] sm:$0xff]  ;;  %v3687_v16 = vld [vmem:[#allocation6 + $0xc8] sm:$0xff]  ;;  %v3692_v17 = vld [vmem:[#allocation6 + $0x38] sm:$0xff] }
  0x22   :  { %2542 = vmatpush3.msra.mxu0 %v3639_v3  ;;  %2577 = vmatpush3.msra.mxu1 %v3649_v6  ;;  %v3695_v18 = vld [vmem:[#allocation6 + $0xc0] sm:$0xff]  ;;  %v3700_v19 = vld [vmem:[#allocation6 + $0x30] sm:$0xff]  ;;  %v3703_v20 = vld [vmem:[#allocation6 + $0xb8] sm:$0xff] }
  0x23   :  { %2543 = vmatprep.subr.mxu0 %v4757_v0  ;;  %2578 = vmatprep.subr.mxu1 %v4757_v0  ;;  %v3708_v21 = vld [vmem:[#allocation6 + $0x28] sm:$0xff]  ;;  %v3711_v22 = vld [vmem:[#allocation6 + $0xb0] sm:$0xff]  ;;  %v3716_v23 = vld [vmem:[#allocation6 + $0x20] sm:$0xff] }
  0x24   :  { %2544 = vmatpush3.msra.mxu0 %v3643_v4  ;;  %2579 = vmatpush3.msra.mxu1 %v3655_v8  ;;  %v3719_v24 = vld [vmem:[#allocation6 + $0xa8] sm:$0xff]  ;;  %v3724_v25 = vld [vmem:[#allocation6 + $0x18] sm:$0xff]  ;;  %v3727_v26 = vld [vmem:[#allocation6 + $0xa0] sm:$0xff] }
  0x25   :  { %2545 = vmatprep.subr.mxu0 %v4757_v0  ;;  %2580 = vmatprep.subr.mxu1 %v4757_v0  ;;  %4776 = vst [vmem:[#allocation12_spill] sm:$0xff] %v3719_v24  ;;  %4777 = vst [vmem:[#allocation13_spill] sm:$0xff] %v3727_v26  ;;  %v3732_v27 = vld [vmem:[#allocation6 + $0x10] sm:$0xff]  ;;  %v3735_v28 = vld [vmem:[#allocation6 + $0x98] sm:$0xff] }
  0x26   :  { %2546 = vmatpush3.msra.mxu0 %v3652_v7  ;;  %2581 = vmatpush3.msra.mxu1 %v3663_v10  ;;  %4778 = vst [vmem:[#allocation14_spill] sm:$0xff] %v3735_v28  ;;  %v3740_v29 = vld [vmem:[#allocation6 + $0x8] sm:$0xff]  ;;  %v3743_v30 = vld [vmem:[#allocation6 + $0x90] sm:$0xff]  ;;  %v3748_v31 = vld [vmem:[#allocation6] sm:$0xff] }
  0x27   :  { %2547 = vmatprep.subr.mxu0 %v4757_v0  ;;  %2582 = vmatprep.subr.mxu1 %v4757_v0  ;;  %4779 = vst [vmem:[#allocation15_spill] sm:$0xff] %v3743_v30  ;;  %v3751_v32 = vld [vmem:[#allocation6 + $0x88] sm:$0xff]  ;;  %v3756_v33 = vld [vmem:[%s4751_s1] sm:$0xff]  ;;  %v3761_v34 = vld [vmem:[#allocation6 + $0x178] sm:$0xff] }
  0x28   :  { %2548 = vmatpush3.msra.mxu0 %v3660_v9  ;;  %2583 = vmatpush3.msra.mxu1 %v3671_v12  ;;  %4780 = vst [vmem:[#allocation16_spill] sm:$0xff] %v3751_v32  ;;  %4781 = vst [vmem:[#allocation17_spill] sm:$0xff] %v3756_v33  ;;  %v3766_v35 = vld [vmem:[#allocation6 + $0x80] sm:$0xff]  ;;  %vm2106_vm1 = vcmp.gt.s32.totalorder %v3756_v33, 0  ;;  %v3771_v36 = vld [vmem:[#allocation6 + $0x170] sm:$0xff]  ;;  %vm2109_vm2 = vcmp.gt.s32.totalorder %v3756_v33, 1 }
  0x29   :  { %2549 = vmatprep.subr.mxu0 %v4757_v0  ;;  %2584 = vmatprep.subr.mxu1 %v4757_v0  ;;  %4782 = vst [vmem:[#allocation18_spill] sm:$0xff] %v3766_v35  ;;  %v3776_v37 = vld [vmem:[#allocation6 + $0x168] sm:$0xff]  ;;  %v347_v38 = vsel %vm2106_vm1, 1, %v4755_v1  ;;  %v3784_v39 = vld [vmem:[#allocation6 + $0x160] sm:$0xff]  ;;  %v3790_v40 = vld [vmem:[#allocation6 + $0x158] sm:$0xff]  ;;  %v593_v41 = vsel %vm2109_vm2, 1, %v4755_v1 }
  0x2a   :  { %2550 = vmatpush3.msra.mxu0 %v3668_v11  ;;  %2585 = vmatpush3.msra.mxu1 %v3679_v14  ;;  %vm2118_vm3 = vcmp.gt.s32.totalorder %v3756_v33, 4  ;;  %v3798_v42 = vld [vmem:[#allocation6 + $0x150] sm:$0xff]  ;;  %v3803_v43 = vld [vmem:[#allocation6 + $0x148] sm:$0xff]  ;;  %vm2124_vm4 = vcmp.gt.s32.totalorder %v3756_v33, 6  ;;  %v3811_v45 = vld [vmem:[#allocation6 + $0x140] sm:$0xff] }
  0x2b   :  { %2551 = vmatprep.subr.mxu0 %v4757_v0  ;;  %2586 = vmatprep.subr.mxu1 %v4757_v0  ;;  %v1334_v44 = vsel %vm2118_vm3, 1, %v4755_v1  ;;  %v3816_v46 = vld [vmem:[#allocation6 + $0x138] sm:$0xff]  ;;  %v1828_v47 = vsel %vm2124_vm4, 1, %v4755_v1  ;;  %v3823_v48 = vld [vmem:[#allocation6 + $0x130] sm:$0xff]  ;;  %v3828_v49 = vld [vmem:[#allocation6 + $0x128] sm:$0xff] }
  0x2c   :  { %2552 = vmatpush3.msra.mxu0 %v3676_v13  ;;  %2587 = vmatpush3.msra.mxu1 %v3687_v16  ;;  %v3834_v50 = vld [vmem:[#allocation6 + $0x120] sm:$0xff]  ;;  %v3840_v51 = vld [vmem:[#allocation6 + $0x118] sm:$0xff]  ;;  %v3846_v52 = vld [vmem:[#allocation6 + $0x110] sm:$0xff] }
  0x2d   :  { %2553 = vmatprep.subr.mxu0 %v4757_v0  ;;  %2588 = vmatprep.subr.mxu1 %v4757_v0  ;;  %v3852_v53 = vld [vmem:[#allocation6 + $0x108] sm:$0xff]  ;;  %v3858_v54 = vld [vmem:[#allocation6 + $0x100] sm:$0xff] }
  0x2e   :  { %2554 = vmatpush3.msra.mxu0 %v3684_v15  ;;  %2589 = vmatpush3.msra.mxu1 %v3695_v18  ;;  %v105_v55 = vld [vmem:[#allocation3] sm:$0xff]  ;;  %v106_v59 = vld [vmem:[#allocation3 + $0x8] sm:$0xff] }
  0x2f   :  { %2555 = vmatprep.subr.mxu0 %v4757_v0  ;;  %2590 = vmatprep.subr.mxu1 %v4757_v0 }
  0x30   :  { %2556 = vmatpush3.msra.mxu0 %v3692_v17  ;;  %2591 = vmatpush3.msra.mxu1 %v3703_v20 }
  0x31   :  { %2557 = vmatprep.subr.mxu0 %v4757_v0  ;;  %2592 = vmatprep.subr.mxu1 %v4757_v0 }
  0x32   :  { %2558 = vmatpush3.msra.mxu0 %v3700_v19  ;;  %2593 = vmatpush3.msra.mxu1 %v3711_v22 }
  0x33   :  { %2559 = vmatprep.subr.mxu0 %v4757_v0  ;;  %2594 = vmatprep.subr.mxu1 %v4757_v0 }
  0x34   :  { %2560 = vmatpush3.msra.mxu0 %v3708_v21  ;;  %2595 = vmatpush3.msra.mxu1 %v3719_v24 }
  0x35   :  { %2561 = vmatprep.subr.mxu0 %v4757_v0  ;;  %2596 = vmatprep.subr.mxu1 %v4757_v0 }
  0x36   :  { %2562 = vmatpush3.msra.mxu0 %v3716_v23  ;;  %2597 = vmatpush3.msra.mxu1 %v3727_v26 }
  0x37   :  { %2563 = vmatprep.subr.mxu0 %v4757_v0  ;;  %2598 = vmatprep.subr.mxu1 %v4757_v0 }
  0x38   :  { %2564 = vmatpush3.msra.mxu0 %v3724_v25  ;;  %2599 = vmatpush3.msra.mxu1 %v3735_v28 }
  0x39   :  { %2565 = vmatprep.subr.mxu0 %v4757_v0  ;;  %2600 = vmatprep.subr.mxu1 %v4757_v0 }
  0x3a   :  { %2566 = vmatpush3.msra.mxu0 %v3732_v27  ;;  %2601 = vmatpush3.msra.mxu1 %v3743_v30 }
  0x3b   :  { %2567 = vmatprep.subr.mxu0 %v4757_v0  ;;  %2602 = vmatprep.subr.mxu1 %v4757_v0 }
  0x3c   :  { %2568 = vmatpush3.msra.mxu0 %v3740_v29  ;;  %2603 = vmatpush3.msra.mxu1 %v3751_v32 }
  0x3d   :  { %2569 = vmatprep.subr.mxu0 %v4757_v0  ;;  %2604 = vmatprep.subr.mxu1 %v4757_v0 }
  0x3e   :  { %2570 = vmatpush3.msra.mxu0 %v3748_v31  ;;  %2605 = vmatpush3.msra.mxu1 %v3766_v35 }
  0x3f   :  { %2572 = vmatmul.mubr.f32.vlgmr.msra.gmra.mxu0 %v4757_v0  ;;  %2609 = vmatprep.subr.mxu0 %v4757_v0 }
  0x40   :  { %2610 = vmatpush3.msra.mxu0 %v3761_v34  ;;  %2607 = vmatmul.mubr.f32.vlgmr.msra.gmra.mxu1 %v4757_v0 }
  0x41   :  { %2611 = vmatprep.subr.mxu0 %v4757_v0  ;;  %2641 = vmatprep.mubr.msk.f32.mxu0 %vm3589_vm0, %v4757_v0 }
  0x42   :  { %2612 = vmatpush3.msra.mxu0 %v3771_v36  ;;  %349 = vperm.xlu0 %3387, %v347_v38  }
  0x43   :  { %2613 = vmatprep.subr.mxu0 %v4757_v0  ;;  %2644 = vmatprep.subr.mxu1 %v4757_v0 }
  0x44   :  { %2614 = vmatpush3.msra.mxu0 %v3776_v37  ;;  %2645 = vmatpush3.msra.mxu1 %v3637_v2 }
  0x45   :  { %2615 = vmatprep.subr.mxu0 %v4757_v0  ;;  %2646 = vmatprep.subr.mxu1 %v4757_v0 }
  0x46   :  { %2616 = vmatpush3.msra.mxu0 %v3784_v39  ;;  %595 = vperm.xlu0 %3387, %v593_v41  }
  0x47   :  { %2617 = vmatprep.subr.mxu0 %v4757_v0  ;;  %2647 = vmatpush3.msra.mxu1 %v3639_v3 }
  0x48   :  { %2618 = vmatpush3.msra.mxu0 %v3790_v40  ;;  %2648 = vmatprep.subr.mxu1 %v4757_v0 }
  0x49   :  { %2619 = vmatprep.subr.mxu0 %v4757_v0  ;;  %2649 = vmatpush3.msra.mxu1 %v3643_v4 }
  0x4a   :  { %2620 = vmatpush3.msra.mxu0 %v3798_v42  ;;  %1336 = vperm.xlu0 %3387, %v1334_v44  }
  0x4b   :  { %2621 = vmatprep.subr.mxu0 %v4757_v0  ;;  %2650 = vmatprep.subr.mxu1 %v4757_v0 }
  0x4c   :  { %2622 = vmatpush3.msra.mxu0 %v3803_v43  ;;  %2651 = vmatpush3.msra.mxu1 %v3652_v7 }
  0x4d   :  { %2623 = vmatprep.subr.mxu0 %v4757_v0  ;;  %2652 = vmatprep.subr.mxu1 %v4757_v0 }
  0x4e   :  { %2624 = vmatpush3.msra.mxu0 %v3811_v45  ;;  %1830 = vperm.xlu0 %3387, %v1828_v47  }
  0x4f   :  { %2625 = vmatprep.subr.mxu0 %v4757_v0  ;;  %2653 = vmatpush3.msra.mxu1 %v3660_v9 }
  0x50   :  { %2626 = vmatpush3.msra.mxu0 %v3816_v46  ;;  %2654 = vmatprep.subr.mxu1 %v4757_v0 }
  0x51   :  { %2627 = vmatprep.subr.mxu0 %v4757_v0  ;;  %2655 = vmatpush3.msra.mxu1 %v3668_v11 }
  0x52   :  { %2628 = vmatpush3.msra.mxu0 %v3823_v48  ;;  %2656 = vmatprep.subr.mxu1 %v4757_v0 }
  0x53   :  { %2629 = vmatprep.subr.mxu0 %v4757_v0  ;;  %2657 = vmatpush3.msra.mxu1 %v3676_v13 }
  0x54   :  { %2630 = vmatpush3.msra.mxu0 %v3828_v49  ;;  %2658 = vmatprep.subr.mxu1 %v4757_v0 }
  0x55   :  { %2631 = vmatprep.subr.mxu0 %v4757_v0  ;;  %2659 = vmatpush3.msra.mxu1 %v3684_v15 }
  0x56   :  { %2632 = vmatpush3.msra.mxu0 %v3834_v50  ;;  %2660 = vmatprep.subr.mxu1 %v4757_v0 }
  0x57   :  { %2633 = vmatprep.subr.mxu0 %v4757_v0  ;;  %2661 = vmatpush3.msra.mxu1 %v3692_v17 }
  0x58   :  { %2634 = vmatpush3.msra.mxu0 %v3840_v51  ;;  %2662 = vmatprep.subr.mxu1 %v4757_v0 }
  0x59   :  { %2635 = vmatprep.subr.mxu0 %v4757_v0  ;;  %2663 = vmatpush3.msra.mxu1 %v3700_v19 }
  0x5a   :  { %2636 = vmatpush3.msra.mxu0 %v3846_v52  ;;  %2664 = vmatprep.subr.mxu1 %v4757_v0 }
  0x5b   :  { %2637 = vmatprep.subr.mxu0 %v4757_v0  ;;  %2665 = vmatpush3.msra.mxu1 %v3708_v21 }
  0x5c   :  { %2638 = vmatpush3.msra.mxu0 %v3852_v53  ;;  %2666 = vmatprep.subr.mxu1 %v4757_v0 }
  0x5d   :  { %2639 = vmatprep.subr.mxu0 %v4757_v0  ;;  %2667 = vmatpush3.msra.mxu1 %v3716_v23 }
  0x5e   :  { %2640 = vmatpush3.msra.mxu0 %v3858_v54  ;;  %2668 = vmatprep.subr.mxu1 %v4757_v0 }
  0x5f   :  { %2642 = vmatmul.mubr.f32.vlgmr.msra.gmra.mxu0 %v4757_v0  ;;  %2679 = vmatprep.subr.mxu0 %v4757_v0 }
  0x60   :  { %2680 = vmatpush3.msra.mxu0 %v3645_v5  ;;  %2669 = vmatpush3.msra.mxu1 %v3724_v25 }
  0x61   :  { %2681 = vmatprep.subr.mxu0 %v4757_v0  ;;  %2670 = vmatprep.subr.mxu1 %v4757_v0 }
  0x62   :  { %2682 = vmatpush3.msra.mxu0 %v3649_v6  ;;  %2671 = vmatpush3.msra.mxu1 %v3732_v27 }
  0x63   :  { %2683 = vmatprep.subr.mxu0 %v4757_v0  ;;  %2672 = vmatprep.subr.mxu1 %v4757_v0 }
  0x64   :  { %2684 = vmatpush3.msra.mxu0 %v3655_v8  ;;  %2673 = vmatpush3.msra.mxu1 %v3740_v29 }
  0x65   :  { %2685 = vmatprep.subr.mxu0 %v4757_v0  ;;  %2674 = vmatprep.subr.mxu1 %v4757_v0 }
  0x66   :  { %2686 = vmatpush3.msra.mxu0 %v3663_v10  ;;  %2675 = vmatpush3.msra.mxu1 %v3748_v31 }
  0x67   :  { %2687 = vmatprep.subr.mxu0 %v4757_v0  ;;  %2676 = vmatprep.mubr.msk.f32.mxu1 %vm3589_vm0, %v4757_v0 }
  0x68   :  { %2688 = vmatpush3.msra.mxu0 %v3671_v12  ;;  %2711 = vmatprep.mubr.msk.f32.mxu0 %vm3589_vm0, %v4757_v0 }
  0x69   :  { %2689 = vmatprep.subr.mxu0 %v4757_v0  ;;  %2714 = vmatprep.subr.mxu1 %v4757_v0 }
  0x6a   :  { %2690 = vmatpush3.msra.mxu0 %v3679_v14 }
  0x6b   :  { %2691 = vmatprep.subr.mxu0 %v4757_v0 }
  0x6c   :  { %2692 = vmatpush3.msra.mxu0 %v3687_v16 }
  0x6d   :  { %2693 = vmatprep.subr.mxu0 %v4757_v0 }
  0x6e   :  { %2694 = vmatpush3.msra.mxu0 %v3695_v18 }
  0x6f   :  { %2695 = vmatprep.subr.mxu0 %v4757_v0 }
  0x70   :  { %2696 = vmatpush3.msra.mxu0 %v3703_v20 }
  0x71   :  { %2697 = vmatprep.subr.mxu0 %v4757_v0 }
  0x72   :  { %2698 = vmatpush3.msra.mxu0 %v3711_v22 }
  0x73   :  { %2699 = vmatprep.subr.mxu0 %v4757_v0 }
  0x74   :  { %2700 = vmatpush3.msra.mxu0 %v3719_v24 }
  0x75   :  { %2701 = vmatprep.subr.mxu0 %v4757_v0 }
  0x76   :  { %2702 = vmatpush3.msra.mxu0 %v3727_v26 }
  0x77   :  { %2703 = vmatprep.subr.mxu0 %v4757_v0 }
  0x78   :  { %2704 = vmatpush3.msra.mxu0 %v3735_v28 }
  0x79   :  { %2705 = vmatprep.subr.mxu0 %v4757_v0 }
  0x7a   :  { %2706 = vmatpush3.msra.mxu0 %v3743_v30 }
  0x7b   :  { %2707 = vmatprep.subr.mxu0 %v4757_v0 }
  0x7c   :  { %2708 = vmatpush3.msra.mxu0 %v3751_v32 }
  0x7d   :  { %2709 = vmatprep.subr.mxu0 %v4757_v0 }
  0x7e   :  { %2710 = vmatpush3.msra.mxu0 %v3766_v35 }
  0x7f   :  { %2749 = vmatprep.subr.mxu0 %v4757_v0  ;;  %v3918_v0 = vld [vmem:[%s4753_s3] ss:$0 sm:$0xff] }
  0xff   :  { %v174_v56 = vpop.f32.mrf.mxu0 }
 0x100   :  { %v178_v57 = vadd.f32 %v174_v56, %v105_v55  ;;  %v251_v61 = vpop.f32.mrf.mxu1 }
 0x101   :  { %v2573_v58 = vpop.f32.mrf.mxu0  ;;  %v255_v62 = vadd.f32 %v251_v61, %v106_v59 }
 0x102   :  { %v2103_v60 = vmul.f32 -1.442695, %v178_v57  ;;  %v2608_v63 = vpop.f32.mrf.mxu1  ;;  %v107_v58 = vld [vmem:[#allocation3 + $0x10] sm:$0xff] }
 0x103   :  { %v2104_v38 = vmul.f32 -1.442695, %v255_v62 }
 0x104   :  { %3389 = vpow2.f32 %v2103_v60 }
 0x105   :  { %3391 = vpow2.f32 %v2104_v38 }
 0x111   :  { %v3390_v41 = vpop.eup %3389 }
 0x112   :  { %v182_v44 = vadd.f32 1.0, %v3390_v41  ;;  %v3392_v47 = vpop.eup %3391 }
 0x113   :  { %v259_v1 = vadd.f32 1.0, %v3392_v47  ;;  %v3921_v47 = vpop.permute.xlu0 %349 }
 0x114   :  { %3393 = vrcp.f32 %v182_v44  ;;  %vm351_vm5 = vcmp.eq.s32.totalorder %v3921_v47, 1 }
 0x115   :  { %3395 = vrcp.f32 %v259_v1 }
 0x11f   :  { %v334_v55 = vpop.f32.mrf.mxu0 }
 0x120   :  { %v335_v56 = vadd.f32 %v3918_v0, %v334_v55  ;;  %v4783_v55 = vmov 0.0  }
 0x121   :  { %v3394_v57 = vpop.eup %3393  ;;  %v2643_v59 = vpop.f32.mrf.mxu0 }
 0x122   :  { %v338_v60 = vmul.f32 %v3394_v57, %v335_v56  ;;  %v3396_v62 = vpop.eup %3395  ;;  %v4785_v56 = vmov 0  }
 0x123   :  { %v341_v63 = vsub.f32 1.0, %v3396_v62  ;;  %v343_v44 = vmul.f32 0.0, %v3396_v62 }
 0x124   :  { %v339_v61 = vadd.f32 %v338_v60, %v107_v58 }
 0x126   :  { %3397 = vtanh.f32 %v339_v61  ;;  %v357_v61 = vld [vmem:[#allocation3 + $0x18] sm:$0xff] }
 0x133   :  { %v3398_v38 = vpop.eup %3397 }
 0x134   :  { %v342_v41 = vmul.f32 %v3398_v38, %v341_v63 }
 0x136   :  { %v3924_v33 = vadd.f32 %v343_v44, %v342_v41 }
 0x138   :  { %v3929_v1 = vsel %vm351_vm5, %v3924_v33, 0.0  ;;  %2677 = vmatmul.mubr.msk.f32.vlgmr.msra.gmra.mxu1 %vm351_vm5, %v3924_v33  ;;  %2712 = vmatmul.mubr.msk.f32.vlgmr.msra.gmra.mxu0 %vm351_vm5, %v3924_v33 }
 0x139   :  { %354 = vst [vmem:[#allocation8] sm:$0xff] %v3929_v1  ;;  %2715 = vmatpush3.msra.mxu1 %v3761_v34  ;;  %2746 = vmatprep.mubr.msk.f32.mxu1 %vm3589_vm0, %v4783_v55 }
 0x13a   :  { %2716 = vmatprep.subr.mxu1 %v4783_v55  ;;  %2750 = vmatpush3.msra.mxu0 %v3637_v2 }
 0x13b   :  { %2717 = vmatpush3.msra.mxu1 %v3771_v36  ;;  %2751 = vmatprep.subr.mxu0 %v4783_v55 }
 0x13c   :  { %2718 = vmatprep.subr.mxu1 %v4783_v55  ;;  %2752 = vmatpush3.msra.mxu0 %v3639_v3 }
 0x13d   :  { %2719 = vmatpush3.msra.mxu1 %v3776_v37  ;;  %2753 = vmatprep.subr.mxu0 %v4783_v55 }
 0x13e   :  { %2720 = vmatprep.subr.mxu1 %v4783_v55  ;;  %2754 = vmatpush3.msra.mxu0 %v3643_v4 }
 0x13f   :  { %2721 = vmatpush3.msra.mxu1 %v3784_v39  ;;  %2755 = vmatprep.subr.mxu0 %v4783_v55 }
 0x140   :  { %2722 = vmatprep.subr.mxu1 %v4783_v55  ;;  %2756 = vmatpush3.msra.mxu0 %v3652_v7 }
 0x141   :  { %2723 = vmatpush3.msra.mxu1 %v3790_v40  ;;  %2757 = vmatprep.subr.mxu0 %v4783_v55 }
 0x142   :  { %2724 = vmatprep.subr.mxu1 %v4783_v55  ;;  %2758 = vmatpush3.msra.mxu0 %v3660_v9 }
 0x143   :  { %2725 = vmatpush3.msra.mxu1 %v3798_v42  ;;  %2759 = vmatprep.subr.mxu0 %v4783_v55 }
 0x144   :  { %2726 = vmatprep.subr.mxu1 %v4783_v55  ;;  %2760 = vmatpush3.msra.mxu0 %v3668_v11 }
 0x145   :  { %2727 = vmatpush3.msra.mxu1 %v3803_v43  ;;  %2761 = vmatprep.subr.mxu0 %v4783_v55 }
 0x146   :  { %2728 = vmatprep.subr.mxu1 %v4783_v55  ;;  %2762 = vmatpush3.msra.mxu0 %v3676_v13 }
 0x147   :  { %2729 = vmatpush3.msra.mxu1 %v3811_v45  ;;  %2763 = vmatprep.subr.mxu0 %v4783_v55 }
 0x148   :  { %2730 = vmatprep.subr.mxu1 %v4783_v55  ;;  %2764 = vmatpush3.msra.mxu0 %v3684_v15 }
 0x149   :  { %2731 = vmatpush3.msra.mxu1 %v3816_v46  ;;  %2765 = vmatprep.subr.mxu0 %v4783_v55 }
 0x14a   :  { %2732 = vmatprep.subr.mxu1 %v4783_v55  ;;  %2766 = vmatpush3.msra.mxu0 %v3692_v17 }
 0x14b   :  { %2733 = vmatpush3.msra.mxu1 %v3823_v48  ;;  %2767 = vmatprep.subr.mxu0 %v4783_v55 }
 0x14c   :  { %2734 = vmatprep.subr.mxu1 %v4783_v55  ;;  %2768 = vmatpush3.msra.mxu0 %v3700_v19 }
 0x14d   :  { %2735 = vmatpush3.msra.mxu1 %v3828_v49  ;;  %2769 = vmatprep.subr.mxu0 %v4783_v55 }
 0x14e   :  { %2736 = vmatprep.subr.mxu1 %v4783_v55  ;;  %2770 = vmatpush3.msra.mxu0 %v3708_v21 }
 0x14f   :  { %2737 = vmatpush3.msra.mxu1 %v3834_v50  ;;  %2771 = vmatprep.subr.mxu0 %v4783_v55 }
 0x150   :  { %2738 = vmatprep.subr.mxu1 %v4783_v55  ;;  %2772 = vmatpush3.msra.mxu0 %v3716_v23 }
 0x151   :  { %2739 = vmatpush3.msra.mxu1 %v3840_v51  ;;  %2773 = vmatprep.subr.mxu0 %v4783_v55 }
 0x152   :  { %2740 = vmatprep.subr.mxu1 %v4783_v55  ;;  %2774 = vmatpush3.msra.mxu0 %v3724_v25 }
 0x153   :  { %2741 = vmatpush3.msra.mxu1 %v3846_v52  ;;  %2775 = vmatprep.subr.mxu0 %v4783_v55 }
 0x154   :  { %2742 = vmatprep.subr.mxu1 %v4783_v55  ;;  %2776 = vmatpush3.msra.mxu0 %v3732_v27 }
 0x155   :  { %2743 = vmatpush3.msra.mxu1 %v3852_v53  ;;  %2777 = vmatprep.subr.mxu0 %v4783_v55 }
 0x156   :  { %2744 = vmatprep.subr.mxu1 %v4783_v55  ;;  %2778 = vmatpush3.msra.mxu0 %v3740_v29 }
 0x157   :  { %2745 = vmatpush3.msra.mxu1 %v3858_v54  ;;  %2779 = vmatprep.subr.mxu0 %v4783_v55 }
 0x158   :  { %2747 = vmatmul.mubr.msk.f32.vlgmr.msra.gmra.mxu1 %vm351_vm5, %v3924_v33  ;;  %2784 = vmatprep.subr.mxu1 %v4783_v55  ;;  %v4784_v33 = vld [vmem:[#allocation17_spill] sm:$0xff] }
 0x159   :  { %2785 = vmatpush3.msra.mxu1 %v3645_v5  ;;  %2780 = vmatpush3.msra.mxu0 %v3748_v31  ;;  %vm2112_vm6 = vcmp.gt.s32.totalorder %v4784_v33, 2  ;;  %vm2115_vm7 = vcmp.gt.s32.totalorder %v4784_v33, 3  ;;  %vm2121_vm8 = vcmp.gt.s32.totalorder %v4784_v33, 5  ;;  %vm2127_vm9 = vcmp.gt.s32.totalorder %v4784_v33, 7 }
 0x15a   :  { %2786 = vmatprep.subr.mxu1 %v4783_v55  ;;  %2781 = vmatprep.mubr.msk.f32.mxu0 %vm3589_vm0, %v4783_v55  ;;  %v840_v57 = vsel %vm2112_vm6, 1, %v4785_v56  ;;  %v1087_v58 = vsel %vm2115_vm7, 1, %v4785_v56  ;;  %v1581_v59 = vsel %vm2121_vm8, 1, %v4785_v56  ;;  %v2075_v60 = vsel %vm2127_vm9, 1, %v4785_v56 }
 0x15b   :  { %2787 = vmatpush3.msra.mxu1 %v3649_v6  ;;  %2816 = vmatprep.mubr.msk.f32.mxu1 %vm3589_vm0, %v4783_v55 }
 0x15c   :  { %2788 = vmatprep.subr.mxu1 %v4783_v55  ;;  %2819 = vmatprep.subr.mxu0 %v4783_v55 }
 0x15d   :  { %2789 = vmatpush3.msra.mxu1 %v3655_v8  ;;  %842 = vperm.xlu1 %3388, %v840_v57   ;;  %v358_v57 = vld [vmem:[#allocation3 + $0x20] sm:$0xff] }
 0x15e   :  { %2790 = vmatprep.subr.mxu1 %v4783_v55 }
 0x15f   :  { %2791 = vmatpush3.msra.mxu1 %v3663_v10 }
 0x160   :  { %2792 = vmatprep.subr.mxu1 %v4783_v55 }
 0x161   :  { %2793 = vmatpush3.msra.mxu1 %v3671_v12  ;;  %1089 = vperm.xlu1 %3388, %v1087_v58  }
 0x162   :  { %2794 = vmatprep.subr.mxu1 %v4783_v55 }
 0x163   :  { %2795 = vmatpush3.msra.mxu1 %v3679_v14 }
 0x164   :  { %2796 = vmatprep.subr.mxu1 %v4783_v55 }
 0x165   :  { %2797 = vmatpush3.msra.mxu1 %v3687_v16  ;;  %1583 = vperm.xlu1 %3388, %v1581_v59  }
 0x166   :  { %2798 = vmatprep.subr.mxu1 %v4783_v55 }
 0x167   :  { %2799 = vmatpush3.msra.mxu1 %v3695_v18 }
 0x168   :  { %2800 = vmatprep.subr.mxu1 %v4783_v55 }
 0x169   :  { %2801 = vmatpush3.msra.mxu1 %v3703_v20  ;;  %2077 = vperm.xlu1 %3388, %v2075_v60  }
 0x16a   :  { %2802 = vmatprep.subr.mxu1 %v4783_v55 }
 0x16b   :  { %2803 = vmatpush3.msra.mxu1 %v3711_v22 }
 0x16c   :  { %2804 = vmatprep.subr.mxu1 %v4783_v55 }
 0x16d   :  { %2805 = vmatpush3.msra.mxu1 %v3719_v24 }
 0x16e   :  { %2806 = vmatprep.subr.mxu1 %v4783_v55 }
 0x16f   :  { %2807 = vmatpush3.msra.mxu1 %v3727_v26  ;;  %v359_v26 = vld [vmem:[#allocation3 + $0x28] sm:$0xff] }
 0x170   :  { %2808 = vmatprep.subr.mxu1 %v4783_v55 }
 0x171   :  { %2809 = vmatpush3.msra.mxu1 %v3735_v28 }
 0x172   :  { %2810 = vmatprep.subr.mxu1 %v4783_v55 }
 0x173   :  { %2811 = vmatpush3.msra.mxu1 %v3743_v30 }
 0x174   :  { %2812 = vmatprep.subr.mxu1 %v4783_v55 }
 0x175   :  { %2813 = vmatpush3.msra.mxu1 %v3751_v32 }
 0x176   :  { %2814 = vmatprep.subr.mxu1 %v4783_v55 }
 0x177   :  { %2815 = vmatpush3.msra.mxu1 %v3766_v35 }
 0x178   :  { %2854 = vmatprep.subr.mxu1 %v4783_v55 }
 0x1f8   :  { %v426_v62 = vpop.f32.mrf.mxu1  ;;  %v503_v63 = vpop.f32.mrf.mxu0 }
 0x1f9   :  { %v430_v38 = vadd.f32 %v426_v62, %v357_v61  ;;  %v507_v35 = vadd.f32 %v503_v63, %v358_v57 }
 0x1fa   :  { %v2678_v41 = vpop.f32.mrf.mxu1  ;;  %v2713_v44 = vpop.f32.mrf.mxu0 }
 0x1fb   :  { %v2107_v47 = vmul.f32 -1.442695, %v430_v38  ;;  %v2108_v32 = vmul.f32 -1.442695, %v507_v35  ;;  %v596_v44 = vpop.permute.xlu0 %595 }
 0x1fc   :  { %vm597_vm10 = vcmp.eq.s32.totalorder %v596_v44, 1  ;;  %v4295_v44 = vld [vmem:[#allocation6 + $0xc8] sm:$0xff] }
 0x1fd   :  { %3399 = vpow2.f32 %v2107_v47 }
 0x1fe   :  { %3401 = vpow2.f32 %v2108_v32 }
 0x20a   :  { %v3400_v58 = vpop.eup %3399 }
 0x20b   :  { %v434_v30 = vadd.f32 1.0, %v3400_v58  ;;  %v3402_v33 = vpop.eup %3401  ;;  %v843_v58 = vpop.permute.xlu1 %842 }
 0x20c   :  { %v511_v59 = vadd.f32 1.0, %v3402_v33  ;;  %vm844_vm11 = vcmp.eq.s32.totalorder %v843_v58, 1 }
 0x20d   :  { %3403 = vrcp.f32 %v434_v30 }
 0x20e   :  { %3405 = vrcp.f32 %v511_v59 }
 0x218   :  { %v580_v28 = vpop.f32.mrf.mxu1 }
 0x219   :  { %v581_v56 = vadd.f32 %v3918_v0, %v580_v28 }
 0x21a   :  { %v3404_v60 = vpop.eup %3403  ;;  %v2748_v24 = vpop.f32.mrf.mxu1 }
 0x21b   :  { %v584_v61 = vmul.f32 %v3404_v60, %v581_v56  ;;  %v3406_v38 = vpop.eup %3405 }
 0x21c   :  { %v587_v41 = vsub.f32 1.0, %v3406_v38  ;;  %v589_v32 = vmul.f32 %v3406_v38, %v3929_v1  ;;  %v4178_v38 = vld [vmem:[#allocation6 + $0x70] sm:$0xff] }
 0x21d   :  { %v585_v62 = vadd.f32 %v584_v61, %v359_v26 }
 0x21f   :  { %3407 = vtanh.f32 %v585_v62  ;;  %v4172_v62 = vld [vmem:[#allocation6 + $0x78] sm:$0xff] }
 0x22c   :  { %v3408_v63 = vpop.eup %3407 }
 0x22d   :  { %v588_v35 = vmul.f32 %v3408_v63, %v587_v41  ;;  %v4279_v41 = vld [vmem:[#allocation6 + $0xe8] sm:$0xff]  ;;  %v4283_v63 = vld [vmem:[#allocation6 + $0xe0] sm:$0xff] }
 0x22f   :  { %v590_v30 = vadd.f32 %v589_v32, %v588_v35  ;;  %v4287_v35 = vld [vmem:[#allocation6 + $0xd8] sm:$0xff]  ;;  %v4291_v32 = vld [vmem:[#allocation6 + $0xd0] sm:$0xff] }
 0x231   :  { %v4054_v47 = vsel %vm597_vm10, %v590_v30, %v3929_v1  ;;  %v599_v28 = vsel %vm597_vm10, %v590_v30, 0.0  ;;  %v4299_v30 = vld [vmem:[#allocation6 + $0xc0] sm:$0xff] }
 0x232   :  { %601 = vst [vmem:[#allocation8 + $0x8] sm:$0xff] %v599_v28  ;;  %2782 = vmatmul.mubr.f32.vlgmr.msra.gmra.mxu0 %v4054_v47  ;;  %2817 = vmatmul.mubr.f32.vlgmr.msra.gmra.mxu1 %v4054_v47  ;;  %v4307_v28 = vld [vmem:[#allocation6 + $0xb0] sm:$0xff] }
 0x233   :  { %2820 = vmatpush3.msra.mxu0 %v3761_v34  ;;  %2851 = vmatprep.mubr.msk.f32.mxu0 %vm3589_vm0, %v4783_v55 }
 0x234   :  { %2821 = vmatprep.subr.mxu0 %v4783_v55  ;;  %2855 = vmatpush3.msra.mxu1 %v3637_v2  ;;  %v4786_v2 = vld [vmem:[#allocation12_spill] sm:$0xff] }
 0x235   :  { %2822 = vmatpush3.msra.mxu0 %v3771_v36  ;;  %2856 = vmatprep.subr.mxu1 %v4783_v55 }
 0x236   :  { %2823 = vmatprep.subr.mxu0 %v4783_v55  ;;  %2857 = vmatpush3.msra.mxu1 %v3639_v3  ;;  %v4787_v3 = vld [vmem:[#allocation13_spill] sm:$0xff] }
 0x237   :  { %2824 = vmatpush3.msra.mxu0 %v3776_v37  ;;  %2858 = vmatprep.subr.mxu1 %v4783_v55 }
 0x238   :  { %2825 = vmatprep.subr.mxu0 %v4783_v55  ;;  %2859 = vmatpush3.msra.mxu1 %v3643_v4  ;;  %v4788_v4 = vld [vmem:[#allocation14_spill] sm:$0xff] }
 0x239   :  { %2826 = vmatpush3.msra.mxu0 %v3784_v39  ;;  %2860 = vmatprep.subr.mxu1 %v4783_v55 }
 0x23a   :  { %2827 = vmatprep.subr.mxu0 %v4783_v55  ;;  %2861 = vmatpush3.msra.mxu1 %v3652_v7  ;;  %v4791_v7 = vld [vmem:[#allocation18_spill] sm:$0xff] }
 0x23b   :  { %2828 = vmatpush3.msra.mxu0 %v3790_v40  ;;  %2862 = vmatprep.subr.mxu1 %v4783_v55 }
 0x23c   :  { %2829 = vmatprep.subr.mxu0 %v4783_v55  ;;  %2863 = vmatpush3.msra.mxu1 %v3660_v9 }
 0x23d   :  { %2830 = vmatpush3.msra.mxu0 %v3798_v42  ;;  %2864 = vmatprep.subr.mxu1 %v4783_v55 }
 0x23e   :  { %2831 = vmatprep.subr.mxu0 %v4783_v55  ;;  %2865 = vmatpush3.msra.mxu1 %v3668_v11 }
 0x23f   :  { %2832 = vmatpush3.msra.mxu0 %v3803_v43  ;;  %2866 = vmatprep.subr.mxu1 %v4783_v55 }
 0x240   :  { %2833 = vmatprep.subr.mxu0 %v4783_v55  ;;  %2867 = vmatpush3.msra.mxu1 %v3676_v13 }
 0x241   :  { %2834 = vmatpush3.msra.mxu0 %v3811_v45  ;;  %2868 = vmatprep.subr.mxu1 %v4783_v55 }
 0x242   :  { %2835 = vmatprep.subr.mxu0 %v4783_v55  ;;  %2869 = vmatpush3.msra.mxu1 %v3684_v15  ;;  %v605_v15 = vld [vmem:[#allocation3 + $0x38] sm:$0xff] }
 0x243   :  { %2836 = vmatpush3.msra.mxu0 %v3816_v46  ;;  %2870 = vmatprep.subr.mxu1 %v4783_v55 }
 0x244   :  { %2837 = vmatprep.subr.mxu0 %v4783_v55  ;;  %2871 = vmatpush3.msra.mxu1 %v3692_v17 }
 0x245   :  { %2838 = vmatpush3.msra.mxu0 %v3823_v48  ;;  %2872 = vmatprep.subr.mxu1 %v4783_v55 }
 0x246   :  { %2839 = vmatprep.subr.mxu0 %v4783_v55  ;;  %2873 = vmatpush3.msra.mxu1 %v3700_v19 }
 0x247   :  { %2840 = vmatpush3.msra.mxu0 %v3828_v49  ;;  %2874 = vmatprep.subr.mxu1 %v4783_v55 }
 0x248   :  { %2841 = vmatprep.subr.mxu0 %v4783_v55  ;;  %2875 = vmatpush3.msra.mxu1 %v3708_v21 }
 0x249   :  { %2842 = vmatpush3.msra.mxu0 %v3834_v50  ;;  %2876 = vmatprep.subr.mxu1 %v4783_v55 }
 0x24a   :  { %2843 = vmatprep.subr.mxu0 %v4783_v55  ;;  %2877 = vmatpush3.msra.mxu1 %v3716_v23 }
 0x24b   :  { %2844 = vmatpush3.msra.mxu0 %v3840_v51  ;;  %2878 = vmatprep.subr.mxu1 %v4783_v55 }
 0x24c   :  { %2845 = vmatprep.subr.mxu0 %v4783_v55  ;;  %2879 = vmatpush3.msra.mxu1 %v3724_v25  ;;  %v606_v25 = vld [vmem:[#allocation3 + $0x40] sm:$0xff] }
 0x24d   :  { %2846 = vmatpush3.msra.mxu0 %v3846_v52  ;;  %2880 = vmatprep.subr.mxu1 %v4783_v55 }
 0x24e   :  { %2847 = vmatprep.subr.mxu0 %v4783_v55  ;;  %2881 = vmatpush3.msra.mxu1 %v3732_v27 }
 0x24f   :  { %2848 = vmatpush3.msra.mxu0 %v3852_v53  ;;  %2882 = vmatprep.subr.mxu1 %v4783_v55 }
 0x250   :  { %2849 = vmatprep.subr.mxu0 %v4783_v55  ;;  %2883 = vmatpush3.msra.mxu1 %v3740_v29 }
 0x251   :  { %2850 = vmatpush3.msra.mxu0 %v3858_v54  ;;  %2884 = vmatprep.subr.mxu1 %v4783_v55 }
 0x252   :  { %2852 = vmatmul.mubr.f32.vlgmr.msra.gmra.mxu0 %v4054_v47  ;;  %2889 = vmatprep.subr.mxu0 %v4783_v55 }
 0x253   :  { %2890 = vmatpush3.msra.mxu0 %v3645_v5  ;;  %2885 = vmatpush3.msra.mxu1 %v3748_v31  ;;  %v4789_v5 = vld [vmem:[#allocation15_spill] sm:$0xff] }
 0x254   :  { %2891 = vmatprep.subr.mxu0 %v4783_v55  ;;  %2886 = vmatprep.mubr.msk.f32.mxu1 %vm3589_vm0, %v4783_v55 }
 0x255   :  { %2892 = vmatpush3.msra.mxu0 %v3649_v6  ;;  %2921 = vmatprep.mubr.msk.f32.mxu0 %vm3589_vm0, %v4783_v55  ;;  %v4790_v6 = vld [vmem:[#allocation16_spill] sm:$0xff] }
 0x256   :  { %2893 = vmatprep.subr.mxu0 %v4783_v55  ;;  %2924 = vmatprep.subr.mxu1 %v4783_v55 }
 0x257   :  { %2894 = vmatpush3.msra.mxu0 %v3655_v8  ;;  %v604_v8 = vld [vmem:[#allocation3 + $0x30] sm:$0xff] }
 0x258   :  { %2895 = vmatprep.subr.mxu0 %v4783_v55 }
 0x259   :  { %2896 = vmatpush3.msra.mxu0 %v3663_v10 }
 0x25a   :  { %2897 = vmatprep.subr.mxu0 %v4783_v55 }
 0x25b   :  { %2898 = vmatpush3.msra.mxu0 %v3671_v12 }
 0x25c   :  { %2899 = vmatprep.subr.mxu0 %v4783_v55 }
 0x25d   :  { %2900 = vmatpush3.msra.mxu0 %v3679_v14 }
 0x25e   :  { %2901 = vmatprep.subr.mxu0 %v4783_v55 }
 0x25f   :  { %2902 = vmatpush3.msra.mxu0 %v3687_v16 }
 0x260   :  { %2903 = vmatprep.subr.mxu0 %v4783_v55 }
 0x261   :  { %2904 = vmatpush3.msra.mxu0 %v3695_v18 }
 0x262   :  { %2905 = vmatprep.subr.mxu0 %v4783_v55 }
 0x263   :  { %2906 = vmatpush3.msra.mxu0 %v3703_v20 }
 0x264   :  { %2907 = vmatprep.subr.mxu0 %v4783_v55 }
 0x265   :  { %2908 = vmatpush3.msra.mxu0 %v3711_v22 }
 0x266   :  { %2909 = vmatprep.subr.mxu0 %v4783_v55 }
 0x267   :  { %2910 = vmatpush3.msra.mxu0 %v4786_v2  ;;  %v4311_v2 = vld [vmem:[#allocation6 + $0xa8] sm:$0xff] }
 0x268   :  { %2911 = vmatprep.subr.mxu0 %v4783_v55  ;;  %4792 = vst [vmem:[#allocation17_spill] sm:$0xff] %v4311_v2 }
 0x269   :  { %2912 = vmatpush3.msra.mxu0 %v4787_v3  ;;  %v4315_v3 = vld [vmem:[#allocation6 + $0xa0] sm:$0xff] }
 0x26a   :  { %2913 = vmatprep.subr.mxu0 %v4783_v55  ;;  %4793 = vst [vmem:[#allocation12_spill] sm:$0xff] %v4315_v3 }
 0x26b   :  { %2914 = vmatpush3.msra.mxu0 %v4788_v4  ;;  %v4319_v4 = vld [vmem:[#allocation6 + $0x98] sm:$0xff] }
 0x26c   :  { %2915 = vmatprep.subr.mxu0 %v4783_v55  ;;  %4794 = vst [vmem:[#allocation13_spill] sm:$0xff] %v4319_v4 }
 0x26d   :  { %2916 = vmatpush3.msra.mxu0 %v4789_v5  ;;  %v4323_v5 = vld [vmem:[#allocation6 + $0x90] sm:$0xff] }
 0x26e   :  { %2917 = vmatprep.subr.mxu0 %v4783_v55  ;;  %4795 = vst [vmem:[#allocation14_spill] sm:$0xff] %v4323_v5 }
 0x26f   :  { %2918 = vmatpush3.msra.mxu0 %v4790_v6  ;;  %v4327_v6 = vld [vmem:[#allocation6 + $0x88] sm:$0xff] }
 0x270   :  { %2919 = vmatprep.subr.mxu0 %v4783_v55  ;;  %4796 = vst [vmem:[#allocation15_spill] sm:$0xff] %v4327_v6 }
 0x271   :  { %2920 = vmatpush3.msra.mxu0 %v4791_v7  ;;  %v4331_v7 = vld [vmem:[#allocation6 + $0x80] sm:$0xff] }
 0x272   :  { %2959 = vmatprep.subr.mxu0 %v4783_v55  ;;  %4797 = vst [vmem:[#allocation16_spill] sm:$0xff] %v4331_v7 }
 0x2f2   :  { %v673_v9 = vpop.f32.mrf.mxu0  ;;  %v750_v10 = vpop.f32.mrf.mxu1 }
 0x2f3   :  { %v677_v11 = vadd.f32 %v673_v9, %v604_v8  ;;  %v754_v16 = vadd.f32 %v750_v10, %v605_v15  ;;  %v851_v8 = vld [vmem:[#allocation3 + $0x48] sm:$0xff]  ;;  %v852_v15 = vld [vmem:[#allocation3 + $0x50] sm:$0xff] }
 0x2f4   :  { %v2783_v12 = vpop.f32.mrf.mxu0  ;;  %v2818_v13 = vpop.f32.mrf.mxu1 }
 0x2f5   :  { %v2110_v14 = vmul.f32 -1.442695, %v677_v11  ;;  %v2111_v17 = vmul.f32 -1.442695, %v754_v16 }
 0x2f7   :  { %3409 = vpow2.f32 %v2110_v14 }
 0x2f8   :  { %3411 = vpow2.f32 %v2111_v17 }
 0x304   :  { %v3410_v18 = vpop.eup %3409 }
 0x305   :  { %v681_v19 = vadd.f32 1.0, %v3410_v18  ;;  %v3412_v20 = vpop.eup %3411 }
 0x306   :  { %v758_v21 = vadd.f32 1.0, %v3412_v20 }
 0x307   :  { %3413 = vrcp.f32 %v681_v19 }
 0x308   :  { %3415 = vrcp.f32 %v758_v21 }
 0x312   :  { %v827_v22 = vpop.f32.mrf.mxu0 }
 0x313   :  { %v828_v23 = vadd.f32 %v3918_v0, %v827_v22 }
 0x314   :  { %v3414_v24 = vpop.eup %3413  ;;  %v2853_v26 = vpop.f32.mrf.mxu0 }
 0x315   :  { %v831_v27 = vmul.f32 %v3414_v24, %v828_v23  ;;  %v3416_v31 = vpop.eup %3415 }
 0x316   :  { %v834_v1 = vsub.f32 1.0, %v3416_v31  ;;  %v836_v59 = vmul.f32 %v3416_v31, %v4054_v47 }
 0x317   :  { %v832_v29 = vadd.f32 %v831_v27, %v606_v25  ;;  %v853_v25 = vld [vmem:[#allocation3 + $0x58] sm:$0xff] }
 0x319   :  { %3417 = vtanh.f32 %v832_v29 }
 0x326   :  { %v3418_v57 = vpop.eup %3417 }
 0x327   :  { %v835_v33 = vmul.f32 %v3418_v57, %v834_v1 }
 0x329   :  { %v837_v56 = vadd.f32 %v836_v59, %v835_v33  ;;  %v1090_v59 = vpop.permute.xlu1 %1089 }
 0x32a   :  { %vm1091_vm12 = vcmp.eq.s32.totalorder %v1090_v59, 1 }
 0x32b   :  { %v4164_v60 = vsel %vm844_vm11, %v837_v56, %v4054_v47  ;;  %v846_v61 = vsel %vm844_vm11, %v837_v56, 0.0  ;;  %v4303_v47 = vld [vmem:[#allocation6 + $0xb8] sm:$0xff] }
 0x32c   :  { %848 = vst [vmem:[#allocation8 + $0x10] sm:$0xff] %v846_v61  ;;  %2887 = vmatmul.mubr.f32.vlgmr.msra.gmra.mxu1 %v4164_v60  ;;  %2922 = vmatmul.mubr.f32.vlgmr.msra.gmra.mxu0 %v4164_v60 }
 0x32d   :  { %2925 = vmatpush3.msra.mxu1 %v3761_v34  ;;  %2956 = vmatprep.mubr.msk.f32.mxu1 %vm3589_vm0, %v4783_v55  ;;  %v4184_v34 = vld [vmem:[#allocation6 + $0x68] sm:$0xff] }
 0x32e   :  { %2926 = vmatprep.subr.mxu1 %v4783_v55  ;;  %2960 = vmatpush3.msra.mxu0 %v4172_v62 }
 0x32f   :  { %2927 = vmatpush3.msra.mxu1 %v3771_v36  ;;  %2961 = vmatprep.subr.mxu0 %v4783_v55  ;;  %v4190_v36 = vld [vmem:[#allocation6 + $0x60] sm:$0xff] }
 0x330   :  { %2928 = vmatprep.subr.mxu1 %v4783_v55  ;;  %2962 = vmatpush3.msra.mxu0 %v4178_v38 }
 0x331   :  { %2929 = vmatpush3.msra.mxu1 %v3776_v37  ;;  %2963 = vmatprep.subr.mxu0 %v4783_v55  ;;  %v4196_v37 = vld [vmem:[#allocation6 + $0x58] sm:$0xff] }
 0x332   :  { %2930 = vmatprep.subr.mxu1 %v4783_v55  ;;  %2964 = vmatpush3.msra.mxu0 %v4184_v34 }
 0x333   :  { %2931 = vmatpush3.msra.mxu1 %v3784_v39  ;;  %2965 = vmatprep.subr.mxu0 %v4783_v55  ;;  %v4202_v39 = vld [vmem:[#allocation6 + $0x50] sm:$0xff] }
 0x334   :  { %2932 = vmatprep.subr.mxu1 %v4783_v55  ;;  %2966 = vmatpush3.msra.mxu0 %v4190_v36 }
 0x335   :  { %2933 = vmatpush3.msra.mxu1 %v3790_v40  ;;  %2967 = vmatprep.subr.mxu0 %v4783_v55  ;;  %v4208_v40 = vld [vmem:[#allocation6 + $0x48] sm:$0xff] }
 0x336   :  { %2934 = vmatprep.subr.mxu1 %v4783_v55  ;;  %2968 = vmatpush3.msra.mxu0 %v4196_v37 }
 0x337   :  { %2935 = vmatpush3.msra.mxu1 %v3798_v42  ;;  %2969 = vmatprep.subr.mxu0 %v4783_v55  ;;  %v4214_v42 = vld [vmem:[#allocation6 + $0x40] sm:$0xff] }
 0x338   :  { %2936 = vmatprep.subr.mxu1 %v4783_v55  ;;  %2970 = vmatpush3.msra.mxu0 %v4202_v39 }
 0x339   :  { %2937 = vmatpush3.msra.mxu1 %v3803_v43  ;;  %2971 = vmatprep.subr.mxu0 %v4783_v55  ;;  %v4220_v43 = vld [vmem:[#allocation6 + $0x38] sm:$0xff] }
 0x33a   :  { %2938 = vmatprep.subr.mxu1 %v4783_v55  ;;  %2972 = vmatpush3.msra.mxu0 %v4208_v40 }
 0x33b   :  { %2939 = vmatpush3.msra.mxu1 %v3811_v45  ;;  %2973 = vmatprep.subr.mxu0 %v4783_v55  ;;  %v4226_v45 = vld [vmem:[#allocation6 + $0x30] sm:$0xff] }
 0x33c   :  { %2940 = vmatprep.subr.mxu1 %v4783_v55  ;;  %2974 = vmatpush3.msra.mxu0 %v4214_v42 }
 0x33d   :  { %2941 = vmatpush3.msra.mxu1 %v3816_v46  ;;  %2975 = vmatprep.subr.mxu0 %v4783_v55  ;;  %v4232_v46 = vld [vmem:[#allocation6 + $0x28] sm:$0xff] }
 0x33e   :  { %2942 = vmatprep.subr.mxu1 %v4783_v55  ;;  %2976 = vmatpush3.msra.mxu0 %v4220_v43 }
 0x33f   :  { %2943 = vmatpush3.msra.mxu1 %v3823_v48  ;;  %2977 = vmatprep.subr.mxu0 %v4783_v55  ;;  %v4238_v48 = vld [vmem:[#allocation6 + $0x20] sm:$0xff] }
 0x340   :  { %2944 = vmatprep.subr.mxu1 %v4783_v55  ;;  %2978 = vmatpush3.msra.mxu0 %v4226_v45 }
 0x341   :  { %2945 = vmatpush3.msra.mxu1 %v3828_v49  ;;  %2979 = vmatprep.subr.mxu0 %v4783_v55  ;;  %v4244_v49 = vld [vmem:[#allocation6 + $0x18] sm:$0xff] }
 0x342   :  { %2946 = vmatprep.subr.mxu1 %v4783_v55  ;;  %2980 = vmatpush3.msra.mxu0 %v4232_v46 }
 0x343   :  { %2947 = vmatpush3.msra.mxu1 %v3834_v50  ;;  %2981 = vmatprep.subr.mxu0 %v4783_v55  ;;  %v4250_v50 = vld [vmem:[#allocation6 + $0x10] sm:$0xff] }
 0x344   :  { %2948 = vmatprep.subr.mxu1 %v4783_v55  ;;  %2982 = vmatpush3.msra.mxu0 %v4238_v48 }
 0x345   :  { %2949 = vmatpush3.msra.mxu1 %v3840_v51  ;;  %2983 = vmatprep.subr.mxu0 %v4783_v55  ;;  %v4256_v51 = vld [vmem:[#allocation6 + $0x8] sm:$0xff] }
 0x346   :  { %2950 = vmatprep.subr.mxu1 %v4783_v55  ;;  %2984 = vmatpush3.msra.mxu0 %v4244_v49 }
 0x347   :  { %2951 = vmatpush3.msra.mxu1 %v3846_v52  ;;  %2985 = vmatprep.subr.mxu0 %v4783_v55  ;;  %v4263_v52 = vld [vmem:[#allocation6 + $0xf8] sm:$0xff] }
 0x348   :  { %2952 = vmatprep.subr.mxu1 %v4783_v55  ;;  %2986 = vmatpush3.msra.mxu0 %v4250_v50 }
 0x349   :  { %2953 = vmatpush3.msra.mxu1 %v3852_v53  ;;  %2987 = vmatprep.subr.mxu0 %v4783_v55  ;;  %v4266_v53 = vld [vmem:[#allocation6] sm:$0xff] }
 0x34a   :  { %2954 = vmatprep.subr.mxu1 %v4783_v55  ;;  %2988 = vmatpush3.msra.mxu0 %v4256_v51 }
 0x34b   :  { %2955 = vmatpush3.msra.mxu1 %v3858_v54  ;;  %2989 = vmatprep.subr.mxu0 %v4783_v55  ;;  %v4272_v54 = vld [vmem:[#allocation6 + $0xf0] sm:$0xff] }
 0x34c   :  { %2957 = vmatmul.mubr.f32.vlgmr.msra.gmra.mxu1 %v4164_v60  ;;  %2994 = vmatprep.subr.mxu1 %v4783_v55 }
 0x34d   :  { %2995 = vmatpush3.msra.mxu1 %v4263_v52  ;;  %2990 = vmatpush3.msra.mxu0 %v4266_v53 }
 0x34e   :  { %2996 = vmatprep.subr.mxu1 %v4783_v55  ;;  %2991 = vmatprep.mubr.msk.f32.mxu0 %vm3589_vm0, %v4783_v55 }
 0x34f   :  { %2997 = vmatpush3.msra.mxu1 %v4272_v54  ;;  %3026 = vmatprep.mubr.msk.f32.mxu1 %vm3589_vm0, %v4783_v55 }
 0x350   :  { %2998 = vmatprep.subr.mxu1 %v4783_v55  ;;  %3029 = vmatprep.subr.mxu0 %v4783_v55 }
 0x351   :  { %2999 = vmatpush3.msra.mxu1 %v4279_v41 }
 0x352   :  { %3000 = vmatprep.subr.mxu1 %v4783_v55 }
 0x353   :  { %3001 = vmatpush3.msra.mxu1 %v4283_v63 }
 0x354   :  { %3002 = vmatprep.subr.mxu1 %v4783_v55 }
 0x355   :  { %3003 = vmatpush3.msra.mxu1 %v4287_v35 }
 0x356   :  { %3004 = vmatprep.subr.mxu1 %v4783_v55 }
 0x357   :  { %3005 = vmatpush3.msra.mxu1 %v4291_v32 }
 0x358   :  { %3006 = vmatprep.subr.mxu1 %v4783_v55 }
 0x359   :  { %3007 = vmatpush3.msra.mxu1 %v4295_v44 }
 0x35a   :  { %3008 = vmatprep.subr.mxu1 %v4783_v55 }
 0x35b   :  { %3009 = vmatpush3.msra.mxu1 %v4299_v30 }
 0x35c   :  { %3010 = vmatprep.subr.mxu1 %v4783_v55 }
 0x35d   :  { %3011 = vmatpush3.msra.mxu1 %v4303_v47 }
 0x35e   :  { %3012 = vmatprep.subr.mxu1 %v4783_v55 }
 0x35f   :  { %3013 = vmatpush3.msra.mxu1 %v4307_v28 }
 0x360   :  { %3014 = vmatprep.subr.mxu1 %v4783_v55 }
 0x361   :  { %3015 = vmatpush3.msra.mxu1 %v4311_v2 }
 0x362   :  { %3016 = vmatprep.subr.mxu1 %v4783_v55 }
 0x363   :  { %3017 = vmatpush3.msra.mxu1 %v4315_v3 }
 0x364   :  { %3018 = vmatprep.subr.mxu1 %v4783_v55 }
 0x365   :  { %3019 = vmatpush3.msra.mxu1 %v4319_v4 }
 0x366   :  { %3020 = vmatprep.subr.mxu1 %v4783_v55 }
 0x367   :  { %3021 = vmatpush3.msra.mxu1 %v4323_v5 }
 0x368   :  { %3022 = vmatprep.subr.mxu1 %v4783_v55 }
 0x369   :  { %3023 = vmatpush3.msra.mxu1 %v4327_v6 }
 0x36a   :  { %3024 = vmatprep.subr.mxu1 %v4783_v55 }
 0x36b   :  { %3025 = vmatpush3.msra.mxu1 %v4331_v7 }
 0x36c   :  { %3064 = vmatprep.subr.mxu1 %v4783_v55 }
 0x3ec   :  { %v920_v9 = vpop.f32.mrf.mxu1  ;;  %v997_v10 = vpop.f32.mrf.mxu0 }
 0x3ed   :  { %v924_v11 = vadd.f32 %v920_v9, %v851_v8  ;;  %v1001_v16 = vadd.f32 %v997_v10, %v852_v15  ;;  %v4342_v8 = vld [vmem:[#allocation6 + $0x178] sm:$0xff]  ;;  %v4349_v9 = vld [vmem:[#allocation6 + $0x170] sm:$0xff]  ;;  %v4361_v10 = vld [vmem:[#allocation6 + $0x160] sm:$0xff] }
 0x3ee   :  { %v2888_v12 = vpop.f32.mrf.mxu1  ;;  %v2923_v13 = vpop.f32.mrf.mxu0  ;;  %v4391_v15 = vld [vmem:[#allocation6 + $0x138] sm:$0xff] }
 0x3ef   :  { %v2113_v14 = vmul.f32 -1.442695, %v924_v11  ;;  %v2114_v17 = vmul.f32 -1.442695, %v1001_v16  ;;  %v4367_v11 = vld [vmem:[#allocation6 + $0x158] sm:$0xff]  ;;  %v4373_v12 = vld [vmem:[#allocation6 + $0x150] sm:$0xff] }
 0x3f0   :  { %v4379_v13 = vld [vmem:[#allocation6 + $0x148] sm:$0xff]  ;;  %v4397_v16 = vld [vmem:[#allocation6 + $0x130] sm:$0xff] }
 0x3f1   :  { %3419 = vpow2.f32 %v2113_v14  ;;  %v4385_v14 = vld [vmem:[#allocation6 + $0x140] sm:$0xff] }
 0x3f2   :  { %3421 = vpow2.f32 %v2114_v17  ;;  %v4403_v17 = vld [vmem:[#allocation6 + $0x128] sm:$0xff] }
 0x3fe   :  { %v3420_v18 = vpop.eup %3419 }
 0x3ff   :  { %v928_v19 = vadd.f32 1.0, %v3420_v18  ;;  %v3422_v20 = vpop.eup %3421  ;;  %v4409_v18 = vld [vmem:[#allocation6 + $0x120] sm:$0xff] }
 0x400   :  { %v1005_v21 = vadd.f32 1.0, %v3422_v20  ;;  %v4421_v20 = vld [vmem:[#allocation6 + $0x110] sm:$0xff] }
 0x401   :  { %3423 = vrcp.f32 %v928_v19  ;;  %v4415_v19 = vld [vmem:[#allocation6 + $0x118] sm:$0xff] }
 0x402   :  { %3425 = vrcp.f32 %v1005_v21  ;;  %v4427_v21 = vld [vmem:[#allocation6 + $0x108] sm:$0xff] }
 0x40c   :  { %v1074_v22 = vpop.f32.mrf.mxu1 }
 0x40d   :  { %v1075_v23 = vadd.f32 %v3918_v0, %v1074_v22  ;;  %v4433_v22 = vld [vmem:[#allocation6 + $0x100] sm:$0xff] }
 0x40e   :  { %v3424_v24 = vpop.eup %3423  ;;  %v2958_v26 = vpop.f32.mrf.mxu1 }
 0x40f   :  { %v1078_v27 = vmul.f32 %v3424_v24, %v1075_v23  ;;  %v3426_v31 = vpop.eup %3425  ;;  %v1098_v23 = vld [vmem:[#allocation3 + $0x60] sm:$0xff] }
 0x410   :  { %v1081_v1 = vsub.f32 1.0, %v3426_v31  ;;  %v1083_v33 = vmul.f32 %v3426_v31, %v4164_v60 }
 0x411   :  { %v1079_v29 = vadd.f32 %v1078_v27, %v853_v25 }
 0x413   :  { %3427 = vtanh.f32 %v1079_v29 }
 0x420   :  { %v3428_v57 = vpop.eup %3427 }
 0x421   :  { %v1082_v58 = vmul.f32 %v3428_v57, %v1081_v1  ;;  %v1099_v1 = vld [vmem:[#allocation3 + $0x68] sm:$0xff] }
 0x423   :  { %v1084_v56 = vadd.f32 %v1083_v33, %v1082_v58 }
 0x425   :  { %v4338_v61 = vsel %vm1091_vm12, %v1084_v56, %v4164_v60  ;;  %v1093_v0 = vsel %vm1091_vm12, %v1084_v56, 0.0  ;;  %v4355_v60 = vld [vmem:[#allocation6 + $0x168] sm:$0xff] }
 0x426   :  { %1095 = vst [vmem:[#allocation8 + $0x18] sm:$0xff] %v1093_v0  ;;  %2992 = vmatmul.mubr.f32.vlgmr.msra.gmra.mxu0 %v4338_v61  ;;  %3027 = vmatmul.mubr.f32.vlgmr.msra.gmra.mxu1 %v4338_v61 }
 0x427   :  { %3030 = vmatpush3.msra.mxu0 %v4342_v8  ;;  %3061 = vmatprep.mubr.msk.f32.mxu0 %vm3589_vm0, %v4783_v55 }
 0x428   :  { %3031 = vmatprep.subr.mxu0 %v4783_v55  ;;  %3065 = vmatpush3.msra.mxu1 %v4172_v62 }
 0x429   :  { %3032 = vmatpush3.msra.mxu0 %v4349_v9  ;;  %3066 = vmatprep.subr.mxu1 %v4783_v55 }
 0x42a   :  { %3033 = vmatprep.subr.mxu0 %v4783_v55  ;;  %3067 = vmatpush3.msra.mxu1 %v4178_v38 }
 0x42b   :  { %3034 = vmatpush3.msra.mxu0 %v4355_v60  ;;  %3068 = vmatprep.subr.mxu1 %v4783_v55 }
 0x42c   :  { %3035 = vmatprep.subr.mxu0 %v4783_v55  ;;  %3069 = vmatpush3.msra.mxu1 %v4184_v34 }
 0x42d   :  { %3036 = vmatpush3.msra.mxu0 %v4361_v10  ;;  %3070 = vmatprep.subr.mxu1 %v4783_v55 }
 0x42e   :  { %3037 = vmatprep.subr.mxu0 %v4783_v55  ;;  %3071 = vmatpush3.msra.mxu1 %v4190_v36 }
 0x42f   :  { %3038 = vmatpush3.msra.mxu0 %v4367_v11  ;;  %3072 = vmatprep.subr.mxu1 %v4783_v55 }
 0x430   :  { %3039 = vmatprep.subr.mxu0 %v4783_v55  ;;  %3073 = vmatpush3.msra.mxu1 %v4196_v37 }
 0x431   :  { %3040 = vmatpush3.msra.mxu0 %v4373_v12  ;;  %3074 = vmatprep.subr.mxu1 %v4783_v55 }
 0x432   :  { %3041 = vmatprep.subr.mxu0 %v4783_v55  ;;  %3075 = vmatpush3.msra.mxu1 %v4202_v39 }
 0x433   :  { %3042 = vmatpush3.msra.mxu0 %v4379_v13  ;;  %3076 = vmatprep.subr.mxu1 %v4783_v55 }
 0x434   :  { %3043 = vmatprep.subr.mxu0 %v4783_v55  ;;  %3077 = vmatpush3.msra.mxu1 %v4208_v40 }
 0x435   :  { %3044 = vmatpush3.msra.mxu0 %v4385_v14  ;;  %3078 = vmatprep.subr.mxu1 %v4783_v55 }
 0x436   :  { %3045 = vmatprep.subr.mxu0 %v4783_v55  ;;  %3079 = vmatpush3.msra.mxu1 %v4214_v42 }
 0x437   :  { %3046 = vmatpush3.msra.mxu0 %v4391_v15  ;;  %3080 = vmatprep.subr.mxu1 %v4783_v55 }
 0x438   :  { %3047 = vmatprep.subr.mxu0 %v4783_v55  ;;  %3081 = vmatpush3.msra.mxu1 %v4220_v43 }
 0x439   :  { %3048 = vmatpush3.msra.mxu0 %v4397_v16  ;;  %3082 = vmatprep.subr.mxu1 %v4783_v55 }
 0x43a   :  { %3049 = vmatprep.subr.mxu0 %v4783_v55  ;;  %3083 = vmatpush3.msra.mxu1 %v4226_v45 }
 0x43b   :  { %3050 = vmatpush3.msra.mxu0 %v4403_v17  ;;  %3084 = vmatprep.subr.mxu1 %v4783_v55 }
 0x43c   :  { %3051 = vmatprep.subr.mxu0 %v4783_v55  ;;  %3085 = vmatpush3.msra.mxu1 %v4232_v46 }
 0x43d   :  { %3052 = vmatpush3.msra.mxu0 %v4409_v18  ;;  %3086 = vmatprep.subr.mxu1 %v4783_v55 }
 0x43e   :  { %3053 = vmatprep.subr.mxu0 %v4783_v55  ;;  %3087 = vmatpush3.msra.mxu1 %v4238_v48 }
 0x43f   :  { %3054 = vmatpush3.msra.mxu0 %v4415_v19  ;;  %3088 = vmatprep.subr.mxu1 %v4783_v55 }
 0x440   :  { %3055 = vmatprep.subr.mxu0 %v4783_v55  ;;  %3089 = vmatpush3.msra.mxu1 %v4244_v49 }
 0x441   :  { %3056 = vmatpush3.msra.mxu0 %v4421_v20  ;;  %3090 = vmatprep.subr.mxu1 %v4783_v55 }
 0x442   :  { %3057 = vmatprep.subr.mxu0 %v4783_v55  ;;  %3091 = vmatpush3.msra.mxu1 %v4250_v50 }
 0x443   :  { %3058 = vmatpush3.msra.mxu0 %v4427_v21  ;;  %3092 = vmatprep.subr.mxu1 %v4783_v55 }
 0x444   :  { %3059 = vmatprep.subr.mxu0 %v4783_v55  ;;  %3093 = vmatpush3.msra.mxu1 %v4256_v51 }
 0x445   :  { %3060 = vmatpush3.msra.mxu0 %v4433_v22  ;;  %3094 = vmatprep.subr.mxu1 %v4783_v55 }
 0x446   :  { %3062 = vmatmul.mubr.f32.vlgmr.msra.gmra.mxu0 %v4338_v61  ;;  %3099 = vmatprep.subr.mxu0 %v4783_v55 }
 0x447   :  { %3100 = vmatpush3.msra.mxu0 %v4263_v52  ;;  %3095 = vmatpush3.msra.mxu1 %v4266_v53 }
 0x448   :  { %3101 = vmatprep.subr.mxu0 %v4783_v55  ;;  %3096 = vmatprep.mubr.msk.f32.mxu1 %vm3589_vm0, %v4783_v55 }
 0x449   :  { %3102 = vmatpush3.msra.mxu0 %v4272_v54  ;;  %3131 = vmatprep.mubr.msk.f32.mxu0 %vm3589_vm0, %v4783_v55 }
 0x44a   :  { %3103 = vmatprep.subr.mxu0 %v4783_v55  ;;  %3134 = vmatprep.subr.mxu1 %v4783_v55 }
 0x44b   :  { %3104 = vmatpush3.msra.mxu0 %v4279_v41 }
 0x44c   :  { %3105 = vmatprep.subr.mxu0 %v4783_v55 }
 0x44d   :  { %3106 = vmatpush3.msra.mxu0 %v4283_v63 }
 0x44e   :  { %3107 = vmatprep.subr.mxu0 %v4783_v55 }
 0x44f   :  { %3108 = vmatpush3.msra.mxu0 %v4287_v35 }
 0x450   :  { %3109 = vmatprep.subr.mxu0 %v4783_v55 }
 0x451   :  { %3110 = vmatpush3.msra.mxu0 %v4291_v32 }
 0x452   :  { %3111 = vmatprep.subr.mxu0 %v4783_v55 }
 0x453   :  { %3112 = vmatpush3.msra.mxu0 %v4295_v44 }
 0x454   :  { %3113 = vmatprep.subr.mxu0 %v4783_v55 }
 0x455   :  { %3114 = vmatpush3.msra.mxu0 %v4299_v30 }
 0x456   :  { %3115 = vmatprep.subr.mxu0 %v4783_v55 }
 0x457   :  { %3116 = vmatpush3.msra.mxu0 %v4303_v47 }
 0x458   :  { %3117 = vmatprep.subr.mxu0 %v4783_v55 }
 0x459   :  { %3118 = vmatpush3.msra.mxu0 %v4307_v28 }
 0x45a   :  { %3119 = vmatprep.subr.mxu0 %v4783_v55 }
 0x45b   :  { %3120 = vmatpush3.msra.mxu0 %v4311_v2 }
 0x45c   :  { %3121 = vmatprep.subr.mxu0 %v4783_v55 }
 0x45d   :  { %3122 = vmatpush3.msra.mxu0 %v4315_v3 }
 0x45e   :  { %3123 = vmatprep.subr.mxu0 %v4783_v55 }
 0x45f   :  { %3124 = vmatpush3.msra.mxu0 %v4319_v4 }
 0x460   :  { %3125 = vmatprep.subr.mxu0 %v4783_v55 }
 0x461   :  { %3126 = vmatpush3.msra.mxu0 %v4323_v5 }
 0x462   :  { %3127 = vmatprep.subr.mxu0 %v4783_v55 }
 0x463   :  { %3128 = vmatpush3.msra.mxu0 %v4327_v6  ;;  %v4480_v6 = vld [vmem:[%s4753_s3] ss:$0 sm:$0xff]  ;;  %s3591_s3 = smov [#allocation8]  }
 0x464   :  { %3129 = vmatprep.subr.mxu0 %v4783_v55  ;;  %s2090_s30 = sshll.u32 %s3591_s3, 4  ;;  %s2091_s30 = int_to_ptr.vmem [resolvable:$true] %s2090_s30 }
 0x465   :  { %3130 = vmatpush3.msra.mxu0 %v4331_v7  ;;  %s3558_s5 = scalar_lea.vmem %s2091_s30, 1024  ;;  %p3563_p11 = scmp.lt.s32.totalorder %s2091_s30, %s2091_s30 }
 0x466   :  { %3169 = vmatprep.subr.mxu0 %v4783_v55  ;;  %p3559_p10 = scmp.ne.s32.totalorder %s2091_s30, %s3558_s5  ;;  %p3564_p12 = scmp.lt.s32.totalorder %s3558_s5, %s3558_s5 }
 0x468   :  { %p3565_p13 = por %p3564_p12, %p3563_p11 }
 0x46a   :  { %p3566_p0 = pnand %p3565_p13, %p3559_p10 }
 0x4e6   :  { %v1167_v24 = vpop.f32.mrf.mxu0  ;;  %v1244_v25 = vpop.f32.mrf.mxu1 }
 0x4e7   :  { %v1171_v26 = vadd.f32 %v1167_v24, %v1098_v23  ;;  %v1248_v57 = vadd.f32 %v1244_v25, %v1099_v1 }
 0x4e8   :  { %v2993_v27 = vpop.f32.mrf.mxu0  ;;  %v3028_v29 = vpop.f32.mrf.mxu1 }
 0x4e9   :  { %v2116_v31 = vmul.f32 -1.442695, %v1171_v26  ;;  %v2117_v58 = vmul.f32 -1.442695, %v1248_v57  ;;  %v1100_v26 = vld [vmem:[#allocation3 + $0x70] sm:$0xff] }
 0x4eb   :  { %3429 = vpow2.f32 %v2116_v31 }
 0x4ec   :  { %3431 = vpow2.f32 %v2117_v58 }
 0x4f8   :  { %v3430_v33 = vpop.eup %3429 }
 0x4f9   :  { %v1175_v59 = vadd.f32 1.0, %v3430_v33  ;;  %v3432_v56 = vpop.eup %3431 }
 0x4fa   :  { %v1252_v0 = vadd.f32 1.0, %v3432_v56 }
 0x4fb   :  { %3433 = vrcp.f32 %v1175_v59  ;;  %v1337_v59 = vpop.permute.xlu0 %1336 }
 0x4fc   :  { %3435 = vrcp.f32 %v1252_v0  ;;  %vm1338_vm13 = vcmp.eq.s32.totalorder %v1337_v59, 1  ;;  %v4799_v0 = vld [vmem:[#allocation15_spill] sm:$0xff] }
 0x506   :  { %v1321_v7 = vpop.f32.mrf.mxu0 }
 0x507   :  { %v1322_v23 = vadd.f32 %v4480_v6, %v1321_v7 }
 0x508   :  { %v3434_v24 = vpop.eup %3433  ;;  %v3063_v27 = vpop.f32.mrf.mxu0 }
 0x509   :  { %v1325_v25 = vmul.f32 %v3434_v24, %v1322_v23  ;;  %v3436_v31 = vpop.eup %3435  ;;  %v4800_v23 = vld [vmem:[#allocation16_spill] sm:$0xff]  ;;  %v1345_v24 = vld [vmem:[#allocation3 + $0x78] sm:$0xff] }
 0x50a   :  { %v1328_v1 = vsub.f32 1.0, %v3436_v31  ;;  %v1330_v33 = vmul.f32 %v3436_v31, %v4338_v61 }
 0x50b   :  { %v1326_v29 = vadd.f32 %v1325_v25, %v1100_v26 }
 0x50d   :  { %3437 = vtanh.f32 %v1326_v29 }
 0x51a   :  { %v3438_v57 = vpop.eup %3437 }
 0x51b   :  { %v1329_v58 = vmul.f32 %v3438_v57, %v1328_v1  ;;  %v1346_v57 = vld [vmem:[#allocation3 + $0x80] sm:$0xff] }
 0x51d   :  { %v1331_v56 = vadd.f32 %v1330_v33, %v1329_v58 }
 0x51f   :  { %v4485_v5 = vsel %vm1338_vm13, %v1331_v56, %v4338_v61  ;;  %v1340_v7 = vsel %vm1338_vm13, %v1331_v56, 0.0  ;;  %v4798_v61 = vld [vmem:[#allocation14_spill] sm:$0xff] }
 0x520   :  { %1342 = vst [vmem:[#allocation8 + $0x20] sm:$0xff] %v1340_v7  ;;  %3097 = vmatmul.mubr.f32.vlgmr.msra.gmra.mxu1 %v4485_v5  ;;  %3132 = vmatmul.mubr.f32.vlgmr.msra.gmra.mxu0 %v4485_v5 }
 0x521   :  { %3135 = vmatpush3.msra.mxu1 %v4342_v8  ;;  %3166 = vmatprep.mubr.msk.f32.mxu1 %vm3589_vm0, %v4783_v55 }
 0x522   :  { %3136 = vmatprep.subr.mxu1 %v4783_v55  ;;  %3170 = vmatpush3.msra.mxu0 %v4172_v62 }
 0x523   :  { %3137 = vmatpush3.msra.mxu1 %v4349_v9  ;;  %3171 = vmatprep.subr.mxu0 %v4783_v55 }
 0x524   :  { %3138 = vmatprep.subr.mxu1 %v4783_v55  ;;  %3172 = vmatpush3.msra.mxu0 %v4178_v38 }
 0x525   :  { %3139 = vmatpush3.msra.mxu1 %v4355_v60  ;;  %3173 = vmatprep.subr.mxu0 %v4783_v55 }
 0x526   :  { %3140 = vmatprep.subr.mxu1 %v4783_v55  ;;  %3174 = vmatpush3.msra.mxu0 %v4184_v34 }
 0x527   :  { %3141 = vmatpush3.msra.mxu1 %v4361_v10  ;;  %3175 = vmatprep.subr.mxu0 %v4783_v55 }
 0x528   :  { %3142 = vmatprep.subr.mxu1 %v4783_v55  ;;  %3176 = vmatpush3.msra.mxu0 %v4190_v36 }
 0x529   :  { %3143 = vmatpush3.msra.mxu1 %v4367_v11  ;;  %3177 = vmatprep.subr.mxu0 %v4783_v55 }
 0x52a   :  { %3144 = vmatprep.subr.mxu1 %v4783_v55  ;;  %3178 = vmatpush3.msra.mxu0 %v4196_v37 }
 0x52b   :  { %3145 = vmatpush3.msra.mxu1 %v4373_v12  ;;  %3179 = vmatprep.subr.mxu0 %v4783_v55 }
 0x52c   :  { %3146 = vmatprep.subr.mxu1 %v4783_v55  ;;  %3180 = vmatpush3.msra.mxu0 %v4202_v39 }
 0x52d   :  { %3147 = vmatpush3.msra.mxu1 %v4379_v13  ;;  %3181 = vmatprep.subr.mxu0 %v4783_v55 }
 0x52e   :  { %3148 = vmatprep.subr.mxu1 %v4783_v55  ;;  %3182 = vmatpush3.msra.mxu0 %v4208_v40 }
 0x52f   :  { %3149 = vmatpush3.msra.mxu1 %v4385_v14  ;;  %3183 = vmatprep.subr.mxu0 %v4783_v55 }
 0x530   :  { %3150 = vmatprep.subr.mxu1 %v4783_v55  ;;  %3184 = vmatpush3.msra.mxu0 %v4214_v42 }
 0x531   :  { %3151 = vmatpush3.msra.mxu1 %v4391_v15  ;;  %3185 = vmatprep.subr.mxu0 %v4783_v55 }
 0x532   :  { %3152 = vmatprep.subr.mxu1 %v4783_v55  ;;  %3186 = vmatpush3.msra.mxu0 %v4220_v43 }
 0x533   :  { %3153 = vmatpush3.msra.mxu1 %v4397_v16  ;;  %3187 = vmatprep.subr.mxu0 %v4783_v55 }
 0x534   :  { %3154 = vmatprep.subr.mxu1 %v4783_v55  ;;  %3188 = vmatpush3.msra.mxu0 %v4226_v45 }
 0x535   :  { %3155 = vmatpush3.msra.mxu1 %v4403_v17  ;;  %3189 = vmatprep.subr.mxu0 %v4783_v55 }
 0x536   :  { %3156 = vmatprep.subr.mxu1 %v4783_v55  ;;  %3190 = vmatpush3.msra.mxu0 %v4232_v46 }
 0x537   :  { %3157 = vmatpush3.msra.mxu1 %v4409_v18  ;;  %3191 = vmatprep.subr.mxu0 %v4783_v55 }
 0x538   :  { %3158 = vmatprep.subr.mxu1 %v4783_v55  ;;  %3192 = vmatpush3.msra.mxu0 %v4238_v48 }
 0x539   :  { %3159 = vmatpush3.msra.mxu1 %v4415_v19  ;;  %3193 = vmatprep.subr.mxu0 %v4783_v55 }
 0x53a   :  { %3160 = vmatprep.subr.mxu1 %v4783_v55  ;;  %3194 = vmatpush3.msra.mxu0 %v4244_v49 }
 0x53b   :  { %3161 = vmatpush3.msra.mxu1 %v4421_v20  ;;  %3195 = vmatprep.subr.mxu0 %v4783_v55 }
 0x53c   :  { %3162 = vmatprep.subr.mxu1 %v4783_v55  ;;  %3196 = vmatpush3.msra.mxu0 %v4250_v50 }
 0x53d   :  { %3163 = vmatpush3.msra.mxu1 %v4427_v21  ;;  %3197 = vmatprep.subr.mxu0 %v4783_v55 }
 0x53e   :  { %3164 = vmatprep.subr.mxu1 %v4783_v55  ;;  %3198 = vmatpush3.msra.mxu0 %v4256_v51 }
 0x53f   :  { %3165 = vmatpush3.msra.mxu1 %v4433_v22  ;;  %3199 = vmatprep.subr.mxu0 %v4783_v55 }
 0x540   :  { %3167 = vmatmul.mubr.f32.vlgmr.msra.gmra.mxu1 %v4485_v5  ;;  %3204 = vmatprep.subr.mxu1 %v4783_v55 }
 0x541   :  { %3205 = vmatpush3.msra.mxu1 %v4263_v52  ;;  %3200 = vmatpush3.msra.mxu0 %v4266_v53 }
 0x542   :  { %3206 = vmatprep.subr.mxu1 %v4783_v55  ;;  %3201 = vmatprep.mubr.msk.f32.mxu0 %vm3589_vm0, %v4783_v55 }
 0x543   :  { %3207 = vmatpush3.msra.mxu1 %v4272_v54  ;;  %3236 = vmatprep.mubr.msk.f32.mxu1 %vm3589_vm0, %v4783_v55 }
 0x544   :  { %3208 = vmatprep.subr.mxu1 %v4783_v55  ;;  %3239 = vmatprep.subr.mxu0 %v4783_v55 }
 0x545   :  { %3209 = vmatpush3.msra.mxu1 %v4279_v41 }
 0x546   :  { %3210 = vmatprep.subr.mxu1 %v4783_v55 }
 0x547   :  { %3211 = vmatpush3.msra.mxu1 %v4283_v63 }
 0x548   :  { %3212 = vmatprep.subr.mxu1 %v4783_v55 }
 0x549   :  { %3213 = vmatpush3.msra.mxu1 %v4287_v35 }
 0x54a   :  { %3214 = vmatprep.subr.mxu1 %v4783_v55 }
 0x54b   :  { %3215 = vmatpush3.msra.mxu1 %v4291_v32 }
 0x54c   :  { %3216 = vmatprep.subr.mxu1 %v4783_v55 }
 0x54d   :  { %3217 = vmatpush3.msra.mxu1 %v4295_v44 }
 0x54e   :  { %3218 = vmatprep.subr.mxu1 %v4783_v55 }
 0x54f   :  { %3219 = vmatpush3.msra.mxu1 %v4299_v30 }
 0x550   :  { %3220 = vmatprep.subr.mxu1 %v4783_v55 }
 0x551   :  { %3221 = vmatpush3.msra.mxu1 %v4303_v47 }
 0x552   :  { %3222 = vmatprep.subr.mxu1 %v4783_v55 }
 0x553   :  { %3223 = vmatpush3.msra.mxu1 %v4307_v28 }
 0x554   :  { %3224 = vmatprep.subr.mxu1 %v4783_v55 }
 0x555   :  { %3225 = vmatpush3.msra.mxu1 %v4311_v2 }
 0x556   :  { %3226 = vmatprep.subr.mxu1 %v4783_v55 }
 0x557   :  { %3227 = vmatpush3.msra.mxu1 %v4315_v3  ;;  %v1347_v3 = vld [vmem:[#allocation3 + $0x88] sm:$0xff] }
 0x558   :  { %3228 = vmatprep.subr.mxu1 %v4783_v55 }
 0x559   :  { %3229 = vmatpush3.msra.mxu1 %v4319_v4 }
 0x55a   :  { %3230 = vmatprep.subr.mxu1 %v4783_v55 }
 0x55b   :  { %3231 = vmatpush3.msra.mxu1 %v4798_v61 }
 0x55c   :  { %3232 = vmatprep.subr.mxu1 %v4783_v55 }
 0x55d   :  { %3233 = vmatpush3.msra.mxu1 %v4799_v0 }
 0x55e   :  { %3234 = vmatprep.subr.mxu1 %v4783_v55 }
 0x55f   :  { %3235 = vmatpush3.msra.mxu1 %v4800_v23 }
 0x560   :  { %3274 = vmatprep.subr.mxu1 %v4783_v55 }
 0x5e0   :  { %v1414_v26 = vpop.f32.mrf.mxu1  ;;  %v1491_v27 = vpop.f32.mrf.mxu0 }
 0x5e1   :  { %v1418_v25 = vadd.f32 %v1414_v26, %v1345_v24  ;;  %v1495_v58 = vadd.f32 %v1491_v27, %v1346_v57  ;;  %v1584_v57 = vpop.permute.xlu1 %1583 }
 0x5e2   :  { %v3098_v29 = vpop.f32.mrf.mxu1  ;;  %v3133_v31 = vpop.f32.mrf.mxu0  ;;  %vm1585_vm14 = vcmp.eq.s32.totalorder %v1584_v57, 1 }
 0x5e3   :  { %v2119_v1 = vmul.f32 -1.442695, %v1418_v25  ;;  %v2120_v33 = vmul.f32 -1.442695, %v1495_v58 }
 0x5e5   :  { %3439 = vpow2.f32 %v2119_v1 }
 0x5e6   :  { %3441 = vpow2.f32 %v2120_v33 }
 0x5f2   :  { %v3440_v59 = vpop.eup %3439 }
 0x5f3   :  { %v1422_v56 = vadd.f32 1.0, %v3440_v59  ;;  %v3442_v7 = vpop.eup %3441 }
 0x5f4   :  { %v1499_v0 = vadd.f32 1.0, %v3442_v7 }
 0x5f5   :  { %3443 = vrcp.f32 %v1422_v56 }
 0x5f6   :  { %3445 = vrcp.f32 %v1499_v0 }
 0x600   :  { %v1568_v23 = vpop.f32.mrf.mxu1 }
 0x601   :  { %v1569_v61 = vadd.f32 %v4480_v6, %v1568_v23 }
 0x602   :  { %v3444_v4 = vpop.eup %3443  ;;  %v3168_v2 = vpop.f32.mrf.mxu1 }
 0x603   :  { %v1572_v24 = vmul.f32 %v3444_v4, %v1569_v61  ;;  %v3446_v25 = vpop.eup %3445  ;;  %v1831_v61 = vpop.permute.xlu0 %1830 }
 0x604   :  { %v1575_v29 = vsub.f32 1.0, %v3446_v25  ;;  %v1577_v1 = vmul.f32 %v3446_v25, %v4485_v5  ;;  %vm1832_vm15 = vcmp.eq.s32.totalorder %v1831_v61, 1 }
 0x605   :  { %v1573_v26 = vadd.f32 %v1572_v24, %v1347_v3 }
 0x607   :  { %3447 = vtanh.f32 %v1573_v26  ;;  %v1841_v26 = vld [vmem:[#allocation3 + $0xb8] sm:$0xff] }
 0x614   :  { %v3448_v27 = vpop.eup %3447 }
 0x615   :  { %v1576_v31 = vmul.f32 %v3448_v27, %v1575_v29 }
 0x617   :  { %v1578_v58 = vadd.f32 %v1577_v1, %v1576_v31 }
 0x619   :  { %v4595_v33 = vsel %vm1585_vm14, %v1578_v58, %v4485_v5  ;;  %v1587_v23 = vsel %vm1585_vm14, %v1578_v58, 0.0  ;;  %v2078_v58 = vpop.permute.xlu1 %2077 }
 0x61a   :  { %1589 = vst [vmem:[#allocation8 + $0x28] sm:$0xff] %v1587_v23  ;;  %3202 = vmatmul.mubr.f32.vlgmr.msra.gmra.mxu0 %v4595_v33  ;;  %3237 = vmatmul.mubr.f32.vlgmr.msra.gmra.mxu1 %v4595_v33 }
 0x61b   :  { %3240 = vmatpush3.msra.mxu0 %v4342_v8  ;;  %3271 = vmatprep.mubr.msk.f32.mxu0 %vm3589_vm0, %v4783_v55 }
 0x61c   :  { %3241 = vmatprep.subr.mxu0 %v4783_v55  ;;  %3275 = vmatpush3.msra.mxu1 %v4172_v62  ;;  %v4801_v62 = vld [vmem:[#allocation17_spill] sm:$0xff] }
 0x61d   :  { %3242 = vmatpush3.msra.mxu0 %v4349_v9  ;;  %3276 = vmatprep.subr.mxu1 %v4783_v55 }
 0x61e   :  { %3243 = vmatprep.subr.mxu0 %v4783_v55  ;;  %3277 = vmatpush3.msra.mxu1 %v4178_v38  ;;  %v4802_v38 = vld [vmem:[#allocation12_spill] sm:$0xff] }
 0x61f   :  { %3244 = vmatpush3.msra.mxu0 %v4355_v60  ;;  %3278 = vmatprep.subr.mxu1 %v4783_v55 }
 0x620   :  { %3245 = vmatprep.subr.mxu0 %v4783_v55  ;;  %3279 = vmatpush3.msra.mxu1 %v4184_v34  ;;  %v4803_v34 = vld [vmem:[#allocation13_spill] sm:$0xff] }
 0x621   :  { %3246 = vmatpush3.msra.mxu0 %v4361_v10  ;;  %3280 = vmatprep.subr.mxu1 %v4783_v55 }
 0x622   :  { %3247 = vmatprep.subr.mxu0 %v4783_v55  ;;  %3281 = vmatpush3.msra.mxu1 %v4190_v36  ;;  %v4804_v36 = vld [vmem:[#allocation14_spill] sm:$0xff] }
 0x623   :  { %3248 = vmatpush3.msra.mxu0 %v4367_v11  ;;  %3282 = vmatprep.subr.mxu1 %v4783_v55 }
 0x624   :  { %3249 = vmatprep.subr.mxu0 %v4783_v55  ;;  %3283 = vmatpush3.msra.mxu1 %v4196_v37  ;;  %v4805_v37 = vld [vmem:[#allocation15_spill] sm:$0xff] }
 0x625   :  { %3250 = vmatpush3.msra.mxu0 %v4373_v12  ;;  %3284 = vmatprep.subr.mxu1 %v4783_v55 }
 0x626   :  { %3251 = vmatprep.subr.mxu0 %v4783_v55  ;;  %3285 = vmatpush3.msra.mxu1 %v4202_v39  ;;  %v4806_v39 = vld [vmem:[#allocation16_spill] sm:$0xff] }
 0x627   :  { %3252 = vmatpush3.msra.mxu0 %v4379_v13  ;;  %3286 = vmatprep.subr.mxu1 %v4783_v55 }
 0x628   :  { %3253 = vmatprep.subr.mxu0 %v4783_v55  ;;  %3287 = vmatpush3.msra.mxu1 %v4208_v40  ;;  %v1592_v40 = vld [vmem:[#allocation3 + $0x90] sm:$0xff] }
 0x629   :  { %3254 = vmatpush3.msra.mxu0 %v4385_v14  ;;  %3288 = vmatprep.subr.mxu1 %v4783_v55 }
 0x62a   :  { %3255 = vmatprep.subr.mxu0 %v4783_v55  ;;  %3289 = vmatpush3.msra.mxu1 %v4214_v42 }
 0x62b   :  { %3256 = vmatpush3.msra.mxu0 %v4391_v15  ;;  %3290 = vmatprep.subr.mxu1 %v4783_v55 }
 0x62c   :  { %3257 = vmatprep.subr.mxu0 %v4783_v55  ;;  %3291 = vmatpush3.msra.mxu1 %v4220_v43 }
 0x62d   :  { %3258 = vmatpush3.msra.mxu0 %v4397_v16  ;;  %3292 = vmatprep.subr.mxu1 %v4783_v55 }
 0x62e   :  { %3259 = vmatprep.subr.mxu0 %v4783_v55  ;;  %3293 = vmatpush3.msra.mxu1 %v4226_v45 }
 0x62f   :  { %3260 = vmatpush3.msra.mxu0 %v4403_v17  ;;  %3294 = vmatprep.subr.mxu1 %v4783_v55 }
 0x630   :  { %3261 = vmatprep.subr.mxu0 %v4783_v55  ;;  %3295 = vmatpush3.msra.mxu1 %v4232_v46 }
 0x631   :  { %3262 = vmatpush3.msra.mxu0 %v4409_v18  ;;  %3296 = vmatprep.subr.mxu1 %v4783_v55 }
 0x632   :  { %3263 = vmatprep.subr.mxu0 %v4783_v55  ;;  %3297 = vmatpush3.msra.mxu1 %v4238_v48 }
 0x633   :  { %3264 = vmatpush3.msra.mxu0 %v4415_v19  ;;  %3298 = vmatprep.subr.mxu1 %v4783_v55 }
 0x634   :  { %3265 = vmatprep.subr.mxu0 %v4783_v55  ;;  %3299 = vmatpush3.msra.mxu1 %v4244_v49 }
 0x635   :  { %3266 = vmatpush3.msra.mxu0 %v4421_v20  ;;  %3300 = vmatprep.subr.mxu1 %v4783_v55 }
 0x636   :  { %3267 = vmatprep.subr.mxu0 %v4783_v55  ;;  %3301 = vmatpush3.msra.mxu1 %v4250_v50  ;;  %v1593_v50 = vld [vmem:[#allocation3 + $0x98] sm:$0xff] }
 0x637   :  { %3268 = vmatpush3.msra.mxu0 %v4427_v21  ;;  %3302 = vmatprep.subr.mxu1 %v4783_v55 }
 0x638   :  { %3269 = vmatprep.subr.mxu0 %v4783_v55  ;;  %3303 = vmatpush3.msra.mxu1 %v4256_v51 }
 0x639   :  { %3270 = vmatpush3.msra.mxu0 %v4433_v22  ;;  %3304 = vmatprep.subr.mxu1 %v4783_v55 }
 0x63a   :  { %3272 = vmatmul.mubr.f32.vlgmr.msra.gmra.mxu0 %v4595_v33  ;;  %3309 = vmatprep.subr.mxu0 %v4783_v55 }
 0x63b   :  { %3310 = vmatpush3.msra.mxu0 %v4263_v52  ;;  %3305 = vmatpush3.msra.mxu1 %v4266_v53 }
 0x63c   :  { %3311 = vmatprep.subr.mxu0 %v4783_v55  ;;  %3306 = vmatprep.mubr.msk.f32.mxu1 %vm3589_vm0, %v4783_v55 }
 0x63d   :  { %3312 = vmatpush3.msra.mxu0 %v4272_v54  ;;  %3341 = vmatprep.mubr.msk.f32.mxu0 %vm3589_vm0, %v4783_v55 }
 0x63e   :  { %3313 = vmatprep.subr.mxu0 %v4783_v55  ;;  %3344 = vmatprep.subr.mxu1 %v4783_v55 }
 0x63f   :  { %3314 = vmatpush3.msra.mxu0 %v4279_v41 }
 0x640   :  { %3315 = vmatprep.subr.mxu0 %v4783_v55 }
 0x641   :  { %3316 = vmatpush3.msra.mxu0 %v4283_v63 }
 0x642   :  { %3317 = vmatprep.subr.mxu0 %v4783_v55 }
 0x643   :  { %3318 = vmatpush3.msra.mxu0 %v4287_v35 }
 0x644   :  { %3319 = vmatprep.subr.mxu0 %v4783_v55 }
 0x645   :  { %3320 = vmatpush3.msra.mxu0 %v4291_v32 }
 0x646   :  { %3321 = vmatprep.subr.mxu0 %v4783_v55 }
 0x647   :  { %3322 = vmatpush3.msra.mxu0 %v4295_v44 }
 0x648   :  { %3323 = vmatprep.subr.mxu0 %v4783_v55 }
 0x649   :  { %3324 = vmatpush3.msra.mxu0 %v4299_v30  ;;  %v1594_v30 = vld [vmem:[#allocation3 + $0xa0] sm:$0xff] }
 0x64a   :  { %3325 = vmatprep.subr.mxu0 %v4783_v55 }
 0x64b   :  { %3326 = vmatpush3.msra.mxu0 %v4303_v47 }
 0x64c   :  { %3327 = vmatprep.subr.mxu0 %v4783_v55 }
 0x64d   :  { %3328 = vmatpush3.msra.mxu0 %v4307_v28 }
 0x64e   :  { %3329 = vmatprep.subr.mxu0 %v4783_v55 }
 0x64f   :  { %3330 = vmatpush3.msra.mxu0 %v4801_v62 }
 0x650   :  { %3331 = vmatprep.subr.mxu0 %v4783_v55 }
 0x651   :  { %3332 = vmatpush3.msra.mxu0 %v4802_v38 }
 0x652   :  { %3333 = vmatprep.subr.mxu0 %v4783_v55 }
 0x653   :  { %3334 = vmatpush3.msra.mxu0 %v4803_v34 }
 0x654   :  { %3335 = vmatprep.subr.mxu0 %v4783_v55 }
 0x655   :  { %3336 = vmatpush3.msra.mxu0 %v4804_v36 }
 0x656   :  { %3337 = vmatprep.subr.mxu0 %v4783_v55 }
 0x657   :  { %3338 = vmatpush3.msra.mxu0 %v4805_v37 }
 0x658   :  { %3339 = vmatprep.subr.mxu0 %v4783_v55 }
 0x659   :  { %3340 = vmatpush3.msra.mxu0 %v4806_v39 }
 0x6da   :  { %v1661_v42 = vpop.f32.mrf.mxu0  ;;  %v1738_v43 = vpop.f32.mrf.mxu1 }
 0x6db   :  { %v1665_v45 = vadd.f32 %v1661_v42, %v1592_v40  ;;  %v1742_v51 = vadd.f32 %v1738_v43, %v1593_v50 }
 0x6dc   :  { %v3203_v46 = vpop.f32.mrf.mxu0  ;;  %v3238_v48 = vpop.f32.mrf.mxu1 }
 0x6dd   :  { %v2122_v49 = vmul.f32 -1.442695, %v1665_v45  ;;  %v2123_v52 = vmul.f32 -1.442695, %v1742_v51 }
 0x6df   :  { %3449 = vpow2.f32 %v2122_v49 }
 0x6e0   :  { %3451 = vpow2.f32 %v2123_v52 }
 0x6ec   :  { %v3450_v53 = vpop.eup %3449 }
 0x6ed   :  { %v1669_v54 = vadd.f32 1.0, %v3450_v53  ;;  %v3452_v41 = vpop.eup %3451 }
 0x6ee   :  { %v1746_v63 = vadd.f32 1.0, %v3452_v41 }
 0x6ef   :  { %3453 = vrcp.f32 %v1669_v54 }
 0x6f0   :  { %3455 = vrcp.f32 %v1746_v63 }
 0x6fa   :  { %v1815_v35 = vpop.f32.mrf.mxu0 }
 0x6fb   :  { %v1816_v32 = vadd.f32 %v4480_v6, %v1815_v35 }
 0x6fc   :  { %v3454_v44 = vpop.eup %3453  ;;  %v3273_v47 = vpop.f32.mrf.mxu0 }
 0x6fd   :  { %v1819_v28 = vmul.f32 %v3454_v44, %v1816_v32  ;;  %v3456_v3 = vpop.eup %3455 }
 0x6fe   :  { %v1822_v4 = vsub.f32 1.0, %v3456_v3  ;;  %v1824_v59 = vmul.f32 %v3456_v3, %v4595_v33 }
 0x6ff   :  { %v1820_v2 = vadd.f32 %v1819_v28, %v1594_v30 }
 0x701   :  { %3457 = vtanh.f32 %v1820_v2 }
 0x70e   :  { %v3458_v5 = vpop.eup %3457 }
 0x70f   :  { %v1823_v0 = vmul.f32 %v3458_v5, %v1822_v4 }
 0x711   :  { %v1825_v56 = vadd.f32 %v1824_v59, %v1823_v0 }
 0x713   :  { %v4704_v7 = vsel %vm1832_vm15, %v1825_v56, %v4595_v33  ;;  %v1834_v24 = vsel %vm1832_vm15, %v1825_v56, 0.0 }
 0x714   :  { %1836 = vst [vmem:[#allocation8 + $0x30] sm:$0xff] %v1834_v24  ;;  %3307 = vmatmul.mubr.f32.vlgmr.msra.gmra.mxu1 %v4704_v7  ;;  %3342 = vmatmul.mubr.f32.vlgmr.msra.gmra.mxu0 %v4704_v7 }
 0x715   :  { %3345 = vmatpush3.msra.mxu1 %v4342_v8  ;;  %3376 = vmatprep.mubr.msk.f32.mxu1 %vm3589_vm0, %v4783_v55  ;;  %v1839_v8 = vld [vmem:[#allocation3 + $0xa8] sm:$0xff]  ;;  %vm2079_vm0 = vcmp.eq.s32.totalorder %v2078_v58, 1 }
 0x716   :  { %3346 = vmatprep.subr.mxu1 %v4783_v55 }
 0x717   :  { %3347 = vmatpush3.msra.mxu1 %v4349_v9 }
 0x718   :  { %3348 = vmatprep.subr.mxu1 %v4783_v55 }
 0x719   :  { %3349 = vmatpush3.msra.mxu1 %v4355_v60 }
 0x71a   :  { %3350 = vmatprep.subr.mxu1 %v4783_v55 }
 0x71b   :  { %3351 = vmatpush3.msra.mxu1 %v4361_v10 }
 0x71c   :  { %3352 = vmatprep.subr.mxu1 %v4783_v55 }
 0x71d   :  { %3353 = vmatpush3.msra.mxu1 %v4367_v11 }
 0x71e   :  { %3354 = vmatprep.subr.mxu1 %v4783_v55 }
 0x71f   :  { %3355 = vmatpush3.msra.mxu1 %v4373_v12 }
 0x720   :  { %3356 = vmatprep.subr.mxu1 %v4783_v55 }
 0x721   :  { %3357 = vmatpush3.msra.mxu1 %v4379_v13 }
 0x722   :  { %3358 = vmatprep.subr.mxu1 %v4783_v55 }
 0x723   :  { %3359 = vmatpush3.msra.mxu1 %v4385_v14  ;;  %v1840_v14 = vld [vmem:[#allocation3 + $0xb0] sm:$0xff] }
 0x724   :  { %3360 = vmatprep.subr.mxu1 %v4783_v55 }
 0x725   :  { %3361 = vmatpush3.msra.mxu1 %v4391_v15 }
 0x726   :  { %3362 = vmatprep.subr.mxu1 %v4783_v55 }
 0x727   :  { %3363 = vmatpush3.msra.mxu1 %v4397_v16 }
 0x728   :  { %3364 = vmatprep.subr.mxu1 %v4783_v55 }
 0x729   :  { %3365 = vmatpush3.msra.mxu1 %v4403_v17 }
 0x72a   :  { %3366 = vmatprep.subr.mxu1 %v4783_v55 }
 0x72b   :  { %3367 = vmatpush3.msra.mxu1 %v4409_v18 }
 0x72c   :  { %3368 = vmatprep.subr.mxu1 %v4783_v55 }
 0x72d   :  { %3369 = vmatpush3.msra.mxu1 %v4415_v19 }
 0x72e   :  { %3370 = vmatprep.subr.mxu1 %v4783_v55 }
 0x72f   :  { %3371 = vmatpush3.msra.mxu1 %v4421_v20 }
 0x730   :  { %3372 = vmatprep.subr.mxu1 %v4783_v55 }
 0x731   :  { %3373 = vmatpush3.msra.mxu1 %v4427_v21 }
 0x732   :  { %3374 = vmatprep.subr.mxu1 %v4783_v55 }
 0x733   :  { %3375 = vmatpush3.msra.mxu1 %v4433_v22 }
 0x734   :  { %3377 = vmatmul.mubr.f32.vlgmr.msra.gmra.mxu1 %v4704_v7 }
 0x7d4   :  { %v1908_v9 = vpop.f32.mrf.mxu1  ;;  %v1985_v60 = vpop.f32.mrf.mxu0 }
 0x7d5   :  { %v1912_v10 = vadd.f32 %v1908_v9, %v1839_v8  ;;  %v1989_v15 = vadd.f32 %v1985_v60, %v1840_v14 }
 0x7d6   :  { %v3308_v11 = vpop.f32.mrf.mxu1  ;;  %v3343_v12 = vpop.f32.mrf.mxu0 }
 0x7d7   :  { %v2125_v13 = vmul.f32 -1.442695, %v1912_v10  ;;  %v2126_v16 = vmul.f32 -1.442695, %v1989_v15 }
 0x7d9   :  { %3459 = vpow2.f32 %v2125_v13 }
 0x7da   :  { %3461 = vpow2.f32 %v2126_v16 }
 0x7e6   :  { %v3460_v17 = vpop.eup %3459 }
 0x7e7   :  { %v1916_v18 = vadd.f32 1.0, %v3460_v17  ;;  %v3462_v55 = vpop.eup %3461 }
 0x7e8   :  { %v1993_v19 = vadd.f32 1.0, %v3462_v55 }
 0x7e9   :  { %3463 = vrcp.f32 %v1916_v18 }
 0x7ea   :  { %3465 = vrcp.f32 %v1993_v19 }
 0x7f4   :  { %v2062_v20 = vpop.f32.mrf.mxu1 }
 0x7f5   :  { %v2063_v21 = vadd.f32 %v4480_v6, %v2062_v20 }
 0x7f6   :  { %v3464_v22 = vpop.eup %3463  ;;  %v3378_v25 = vpop.f32.mrf.mxu1 }
 0x7f7   :  { %v2066_v29 = vmul.f32 %v3464_v22, %v2063_v21  ;;  %v3466_v31 = vpop.eup %3465 }
 0x7f8   :  { %v2069_v1 = vsub.f32 1.0, %v3466_v31  ;;  %v2071_v33 = vmul.f32 %v3466_v31, %v4704_v7 }
 0x7f9   :  { %v2067_v27 = vadd.f32 %v2066_v29, %v1841_v26 }
 0x7fb   :  { %3467 = vtanh.f32 %v2067_v27 }
 0x808   :  { %v3468_v57 = vpop.eup %3467 }
 0x809   :  { %v2070_v23 = vmul.f32 %v3468_v57, %v2069_v1 }
 0x80b   :  { %v2072_v62 = vadd.f32 %v2071_v33, %v2070_v23 }
 0x80d   :  { %v2081_v6 = vsel %vm2079_vm0, %v2072_v62, 0.0 }
 0x80e   :  { %2083 = vst [vmem:[#allocation8 + $0x38] sm:$0xff] %v2081_v6 }
 0x80f   :  { %3569 = shalt.err (!%p3566_p0)
}
 0x810   :  { %2096 = dma.vmem_to_hbm [thread:$0]  %s2091_s30, 1024, %s4754_s4, [#allocation5], %s3585_s18, %s3585_s18, %s3586_s19  }
 0x811   :  { %3582 = dma.done.wait [#allocation5], 1024  }
 0x812   :  { %3583 = vsyncadd [#allocation5], 4294966272 }
 0x813   :  { %2100 = vsyncpa [#allocation4], 1 }
 0x814   :  { %2101 = vsyncpa [#allocation7], 1 }
 0x815   :  { %2102 = vsyncpa [#allocation5], 1 }

</bundles_post_ra>
